<compile_context>
chip_gen: v7x
topology: tpu7x:2x2x1
jax: 0.10.0
libtpu: 0.0.40
codegen_flags: <defaults>
</compile_context>

<pallas_src>
import jax
import jax.numpy as jnp
from jax.experimental import pallas as pl
from jax.experimental.pallas import tpu as pltpu

F32 = jnp.float32
# Matmul operand dtype. float32 keeps exact-ish parity with the reference; use
# jnp.bfloat16 at production sizes (MXU is natively bf16 on v5e/v6e/v7x).
MM_DTYPE = jnp.float32


def _mm(a, b):
    return jnp.dot(a.astype(MM_DTYPE), b.astype(MM_DTYPE),
                   preferred_element_type=jnp.float32)


# ----------------------------------------------------------------------------
# Fused SpoilerNet kernel.
#   x_ref          : (T*B, E)  time-major-flattened embeddings (row = t*B + b)
#   wgru_wi_ref    : (E, 6H)   word-GRU input weights [r_f, z_f, n_f, r_b, z_b, n_b]
#   wgru_bi_ref    : (1, 6H)   hoisted biases [bir+bhr, biz+bhz, bin] x {fwd, bwd}
#   wh{f,b}_ref    : (H, 3H)   fused recurrent weights [Whr | Whz | Whn] per direction
#   bh{f,b}_n_ref  : (1, H)    recurrent bias of the n gate (stays inside r*(...))
#   attn_w/attn_b/ctx_w        word attention
#   sgru_wi (H,6H), sgru_b (1,6H), sgru_bhn_{f,b} (1,H)   sentence GRU (h0 = 0)
#   final_w (H,2), final_b (1,2)
#   out_ref        : (B, 2)
#   comb_scr       : (T*B, H)  VMEM staging buffer for the combined word-GRU outputs
# ----------------------------------------------------------------------------
def spoilernet_kernel(
    x_ref, wgru_wi_ref, wgru_bi_ref,
    whf_ref, whb_ref,
    bhf_n_ref, bhb_n_ref,
    attn_w_ref, attn_b_ref, ctx_w_ref,
    sgru_wi_ref, sgru_b_ref, sgru_bhn_f_ref, sgru_bhn_b_ref,
    final_w_ref, final_b_ref,
    out_ref,
    comb_scr,
):
    B = out_ref.shape[0]
    H = attn_w_ref.shape[0]
    T = x_ref.shape[0] // B

    # ---- Hoisted input projection: one big MXU matmul, r/z biases folded in. ----
    gi_all = _mm(x_ref[...], wgru_wi_ref[...]) + wgru_bi_ref[...]        # (T*B, 6H)
    # Split per gate/direction ONCE, so the serial loop does no input-side slicing.
    gif_r, gif_z, gif_n, gib_r, gib_z, gib_n = (
        gi_all[:, g * H:(g + 1) * H] for g in range(6))

    # Loop-invariant weight loads / bias broadcasts (hoisted out of the recurrence).
    whf = whf_ref[...]                                                   # (H, 3H)
    whb = whb_ref[...]
    bhf_n = jnp.broadcast_to(bhf_n_ref[...], (B, H))
    bhb_n = jnp.broadcast_to(bhb_n_ref[...], (B, H))

    def row(v, t):                     # (B, H) rows of timestep t
        return v[t * B:(t + 1) * B, :]

    h_f = jnp.zeros((B, H), F32)
    h_b = jnp.zeros((B, H), F32)
    fwd_out = [None] * T
    bwd_out = [None] * T
    for i in range(T):
        tb = T - 1 - i
        # Forward cell @ t=i and backward cell @ t=T-1-i interleaved so the MXU push
        # of one direction overlaps the VPU/EUP sigmoid/tanh of the other.
        ghf = _mm(h_f, whf)                                              # (B, 3H)
        ghb = _mm(h_b, whb)                                              # (B, 3H)
        r_f = jax.nn.sigmoid(row(gif_r, i) + ghf[:, 0 * H:1 * H])
        r_b = jax.nn.sigmoid(row(gib_r, tb) + ghb[:, 0 * H:1 * H])
        z_f = jax.nn.sigmoid(row(gif_z, i) + ghf[:, 1 * H:2 * H])
        z_b = jax.nn.sigmoid(row(gib_z, tb) + ghb[:, 1 * H:2 * H])
        n_f = jnp.tanh(row(gif_n, i) + r_f * (ghf[:, 2 * H:3 * H] + bhf_n))
        n_b = jnp.tanh(row(gib_n, tb) + r_b * (ghb[:, 2 * H:3 * H] + bhb_n))
        h_f = (1.0 - z_f) * n_f + z_f * h_f
        h_b = (1.0 - z_b) * n_b + z_b * h_b
        fwd_out[i] = h_f
        bwd_out[tb] = h_b

    comb = [fwd_out[t] + bwd_out[t] for t in range(T)]                   # T x (B, H)
    for t in range(T):
        comb_scr[t * B:(t + 1) * B, :] = comb[t]

    # ---- Word attention, batched over all T*B rows (two MXU matmuls). ----
    comb2 = comb_scr[...]                                                # (T*B, H)
    u = jnp.tanh(_mm(comb2, attn_w_ref[...]) + attn_b_ref[...])
    s = _mm(u, ctx_w_ref[...])                                           # (T*B, H)

    # Softmax over the T axis (rows t*B .. t*B+B-1 belong to timestep t).
    s_t = [row(s, t) for t in range(T)]
    m = s_t[0]
    for t in range(1, T):
        m = jnp.maximum(m, s_t[t])
    e_t = [jnp.exp(s_t[t] - m) for t in range(T)]
    denom = e_t[0]
    for t in range(1, T):
        denom = denom + e_t[t]
    inv = pl.reciprocal(denom, approx=True)                              # EUP slot
    sent = e_t[0] * comb[0]
    for t in range(1, T):
        sent = sent + e_t[t] * comb[t]
    sent = sent * inv                                                    # (B, H)

    # ---- Sentence biGRU (seq len 1, h0 = 0): one (B,H)@(H,6H) matmul. ----
    g = _mm(sent, sgru_wi_ref[...]) + sgru_b_ref[...]                    # (B, 6H)
    r_f = jax.nn.sigmoid(g[:, 0 * H:1 * H])
    z_f = jax.nn.sigmoid(g[:, 1 * H:2 * H])
    n_f = jnp.tanh(g[:, 2 * H:3 * H] + r_f * sgru_bhn_f_ref[...])
    r_b = jax.nn.sigmoid(g[:, 3 * H:4 * H])
    z_b = jax.nn.sigmoid(g[:, 4 * H:5 * H])
    n_b = jnp.tanh(g[:, 5 * H:6 * H] + r_b * sgru_bhn_b_ref[...])
    comb_s = (1.0 - z_f) * n_f + (1.0 - z_b) * n_b                       # h0=0 -> h=(1-z)*n
    # Dropout(p=0.5) is identity in eval mode.
    # TODO(synk): training-mode stochastic dropout (pltpu.prng_*) not implemented.
    out_ref[...] = _mm(comb_s, final_w_ref[...]) + final_b_ref[...]


# ----------------------------------------------------------------------------
# Parameters (deterministic init; per-gate layout, PyTorch GRU gate order r,z,n)
# ----------------------------------------------------------------------------
def make_params(key, vocab_size, embedding_dim, hidden_dim):
    E, H = embedding_dim, hidden_dim
    ks = iter(jax.random.split(key, 64))
    bound = 1.0 / (H ** 0.5)

    def unif(shape):
        return jax.random.uniform(next(ks), shape, F32, -bound, bound)

    p = {"embedding": jax.random.normal(next(ks), (vocab_size, E), F32)}
    for d in ("f", "b"):                       # word-level bidirectional GRU
        for g in ("r", "z", "n"):
            p[f"wgru_{d}_wi_{g}"] = unif((E, H))
            p[f"wgru_{d}_wh_{g}"] = unif((H, H))
            p[f"wgru_{d}_bi_{g}"] = unif((1, H))
            p[f"wgru_{d}_bh_{g}"] = unif((1, H))
    p["attn_w"], p["attn_b"] = unif((H, H)), unif((1, H))
    p["ctx_w"] = unif((H, H))
    for d in ("f", "b"):                       # sentence-level bidirectional GRU
        for g in ("r", "z", "n"):
            p[f"sgru_{d}_wi_{g}"] = unif((H, H))
            p[f"sgru_{d}_wh_{g}"] = unif((H, H))
            p[f"sgru_{d}_bi_{g}"] = unif((1, H))
            p[f"sgru_{d}_bh_{g}"] = unif((1, H))
    p["final_w"], p["final_b"] = unif((H, 2)), unif((1, 2))
    return p


def _gate_bias(p, prefix, d, g):
    # r/z gate: bi+bh can be folded into the hoisted input projection.
    # n gate: only bi is foldable (bh stays inside r * (h@Wh + bh)).
    if g == "n":
        return p[f"{prefix}_{d}_bi_n"]
    return p[f"{prefix}_{d}_bi_{g}"] + p[f"{prefix}_{d}_bh_{g}"]


# ----------------------------------------------------------------------------
# Forward pass: embedding gather + weight fusion (tiny XLA glue) + one fused kernel
# ----------------------------------------------------------------------------
@jax.jit
def spoilernet_forward(params, token_ids):
    B, T = token_ids.shape
    E = params["embedding"].shape[1]
    H = params["attn_w"].shape[0]

    emb = jnp.take(params["embedding"], token_ids, axis=0)               # (B, T, E)
    x_tm = jnp.transpose(emb, (1, 0, 2)).reshape(T * B, E)               # time-major flat

    order = [(d, g) for d in ("f", "b") for g in ("r", "z", "n")]
    wgru_wi = jnp.concatenate([params[f"wgru_{d}_wi_{g}"] for d, g in order], axis=1)  # (E,6H)
    wgru_bi = jnp.concatenate([_gate_bias(params, "wgru", d, g) for d, g in order], axis=1)
    # Fused recurrent weights: [Whr | Whz | Whn] per direction -> (H, 3H).
    wgru_wh_f = jnp.concatenate([params[f"wgru_f_wh_{g}"] for g in ("r", "z", "n")], axis=1)
    wgru_wh_b = jnp.concatenate([params[f"wgru_b_wh_{g}"] for g in ("r", "z", "n")], axis=1)
    sgru_wi = jnp.concatenate([params[f"sgru_{d}_wi_{g}"] for d, g in order], axis=1)  # (H,6H)
    sgru_b = jnp.concatenate([_gate_bias(params, "sgru", d, g) for d, g in order], axis=1)

    inputs = (
        x_tm, wgru_wi, wgru_bi,
        wgru_wh_f, wgru_wh_b,
        params["wgru_f_bh_n"], params["wgru_b_bh_n"],
        params["attn_w"], params["attn_b"], params["ctx_w"],
        sgru_wi, sgru_b, params["sgru_f_bh_n"], params["sgru_b_bh_n"],
        params["final_w"], params["final_b"],
    )
    vmem = pl.BlockSpec(memory_space=pltpu.MemorySpace.VMEM)

    scores = pl.pallas_call(
        spoilernet_kernel,
        out_shape=jax.ShapeDtypeStruct((B, 2), F32),
        in_specs=[vmem] * len(inputs),
        out_specs=vmem,
        scratch_shapes=[pltpu.VMEM((T * B, H), F32)],
        compiler_params=pltpu.CompilerParams(vmem_limit_bytes=32 * 1024 * 1024),
    )(*inputs)

    return scores[:, None, :]                                            # (B, 1, 2)


# ----------------------------------------------------------------------------
# Pure-JAX reference (full, unsimplified GRU math) for a sanity check
# ----------------------------------------------------------------------------
def _gate_params(p, prefix, d):
    return tuple(p[f"{prefix}_{d}_{k}_{g}"]
                 for k in ("wi", "wh", "bi", "bh") for g in ("r", "z", "n"))


def _ref_gru_cell(x, h, wi_r, wi_z, wi_n, wh_r, wh_z, wh_n,
                  bi_r, bi_z, bi_n, bh_r, bh_z, bh_n):
    r = jax.nn.sigmoid(x @ wi_r + bi_r + h @ wh_r + bh_r)
    z = jax.nn.sigmoid(x @ wi_z + bi_z + h @ wh_z + bh_z)
    n = jnp.tanh(x @ wi_n + bi_n + r * (h @ wh_n + bh_n))
    return (1.0 - z) * n + z * h


def spoilernet_reference(params, token_ids):
    B, T = token_ids.shape
    H = params["attn_w"].shape[0]
    emb = jnp.take(params["embedding"], token_ids, axis=0)               # (B, T, E)

    wf = _gate_params(params, "wgru", "f")
    wb = _gate_params(params, "wgru", "b")
    h = jnp.zeros((B, H), F32)
    fwd = []
    for t in range(T):
        h = _ref_gru_cell(emb[:, t], h, *wf)
        fwd.append(h)
    h = jnp.zeros((B, H), F32)
    bwd = [None] * T
    for t in range(T - 1, -1, -1):
        h = _ref_gru_cell(emb[:, t], h, *wb)
        bwd[t] = h
    combined = jnp.stack([fwd[t] + bwd[t] for t in range(T)], axis=1)    # (B, T, H)

    u = jnp.tanh(combined @ params["attn_w"] + params["attn_b"])
    s = u @ params["ctx_w"]
    dist = jax.nn.softmax(s, axis=1)
    sent = jnp.sum(dist * combined, axis=1)                              # (B, H)

    h0 = jnp.zeros((B, H), F32)
    comb = (_ref_gru_cell(sent, h0, *_gate_params(params, "sgru", "f"))
            + _ref_gru_cell(sent, h0, *_gate_params(params, "sgru", "b")))
    out = comb @ params["final_w"] + params["final_b"]
    return out[:, None, :]


if __name__ == "__main__":
    B, T = 2, 8
    VOCAB, E, H = 50, 32, 32

    key = jax.random.PRNGKey(0)
    k_tok, k_par = jax.random.split(key)
    token_ids = jax.random.randint(k_tok, (B, T), 0, VOCAB, dtype=jnp.int32)
    params = make_params(k_par, VOCAB, E, H)

    out = jax.block_until_ready(spoilernet_forward(params, token_ids))
    ref = jax.block_until_ready(spoilernet_reference(params, token_ids))

    assert out.shape == (B, 1, 2), out.shape
    assert jnp.allclose(out, ref, atol=2e-3, rtol=2e-3), (out, ref)
    print("KERNEL_OK")
</pallas_src>

<mosaic_0001>
module attributes {stable_mosaic.version = 11 : i64} {
  func.func @spoilernet_kernel(%arg0: memref<16x32xf32, #tpu.memory_space<vmem>>, %arg1: memref<32x192xf32, #tpu.memory_space<vmem>>, %arg2: memref<1x192xf32, #tpu.memory_space<vmem>>, %arg3: memref<32x96xf32, #tpu.memory_space<vmem>>, %arg4: memref<32x96xf32, #tpu.memory_space<vmem>>, %arg5: memref<1x32xf32, #tpu.memory_space<vmem>>, %arg6: memref<1x32xf32, #tpu.memory_space<vmem>>, %arg7: memref<32x32xf32, #tpu.memory_space<vmem>>, %arg8: memref<1x32xf32, #tpu.memory_space<vmem>>, %arg9: memref<32x32xf32, #tpu.memory_space<vmem>>, %arg10: memref<32x192xf32, #tpu.memory_space<vmem>>, %arg11: memref<1x192xf32, #tpu.memory_space<vmem>>, %arg12: memref<1x32xf32, #tpu.memory_space<vmem>>, %arg13: memref<1x32xf32, #tpu.memory_space<vmem>>, %arg14: memref<32x2xf32, #tpu.memory_space<vmem>>, %arg15: memref<1x2xf32, #tpu.memory_space<vmem>>, %arg16: memref<2x2xf32, #tpu.memory_space<vmem>>, %arg17: memref<16x32xf32, #tpu.memory_space<vmem>>) attributes {dimension_semantics = [], scalar_prefetch = 0 : i64, scratch_operands = 1 : i64, tpu.core_type = #tpu.core_type<tc>} {
    %c0 = arith.constant 0 : index
    %c0_0 = arith.constant 0 : index
    %0 = vector.load %arg0[%c0, %c0_0] : memref<16x32xf32, #tpu.memory_space<vmem>>, vector<16x32xf32>
    %c0_1 = arith.constant 0 : index
    %c0_2 = arith.constant 0 : index
    %1 = vector.load %arg1[%c0_1, %c0_2] : memref<32x192xf32, #tpu.memory_space<vmem>>, vector<32x192xf32>
    %cst = arith.constant dense<0.000000e+00> : vector<16x192xf32>
    %2 = tpu.matmul %0, %1, %cst {dimension_numbers = #tpu.dot_dimension_numbers<[1], [0], [0], [1], [0, 0, 1, 1], [], []>} : vector<16x32xf32>, vector<32x192xf32>, vector<16x192xf32> -> vector<16x192xf32>
    %c0_3 = arith.constant 0 : index
    %c0_4 = arith.constant 0 : index
    %3 = vector.load %arg2[%c0_3, %c0_4] : memref<1x192xf32, #tpu.memory_space<vmem>>, vector<1x192xf32>
    %4 = vector.broadcast %3 : vector<1x192xf32> to vector<16x192xf32>
    %5 = arith.addf %2, %4 : vector<16x192xf32>
    %6 = vector.extract_strided_slice %5 {offsets = [0, 0], sizes = [16, 32], strides = [1, 1]} : vector<16x192xf32> to vector<16x32xf32>
    %7 = vector.extract_strided_slice %5 {offsets = [0, 32], sizes = [16, 32], strides = [1, 1]} : vector<16x192xf32> to vector<16x32xf32>
    %8 = vector.extract_strided_slice %5 {offsets = [0, 64], sizes = [16, 32], strides = [1, 1]} : vector<16x192xf32> to vector<16x32xf32>
    %9 = vector.extract_strided_slice %5 {offsets = [0, 96], sizes = [16, 32], strides = [1, 1]} : vector<16x192xf32> to vector<16x32xf32>
    %10 = vector.extract_strided_slice %5 {offsets = [0, 128], sizes = [16, 32], strides = [1, 1]} : vector<16x192xf32> to vector<16x32xf32>
    %11 = vector.extract_strided_slice %5 {offsets = [0, 160], sizes = [16, 32], strides = [1, 1]} : vector<16x192xf32> to vector<16x32xf32>
    %c0_5 = arith.constant 0 : index
    %c0_6 = arith.constant 0 : index
    %12 = vector.load %arg3[%c0_5, %c0_6] : memref<32x96xf32, #tpu.memory_space<vmem>>, vector<32x96xf32>
    %c0_7 = arith.constant 0 : index
    %c0_8 = arith.constant 0 : index
    %13 = vector.load %arg4[%c0_7, %c0_8] : memref<32x96xf32, #tpu.memory_space<vmem>>, vector<32x96xf32>
    %c0_9 = arith.constant 0 : index
    %c0_10 = arith.constant 0 : index
    %14 = vector.load %arg5[%c0_9, %c0_10] : memref<1x32xf32, #tpu.memory_space<vmem>>, vector<1x32xf32>
    %15 = vector.shape_cast %14 : vector<1x32xf32> to vector<1x32xf32>
    %16 = vector.broadcast %15 : vector<1x32xf32> to vector<2x32xf32>
    %c0_11 = arith.constant 0 : index
    %c0_12 = arith.constant 0 : index
    %17 = vector.load %arg6[%c0_11, %c0_12] : memref<1x32xf32, #tpu.memory_space<vmem>>, vector<1x32xf32>
    %18 = vector.shape_cast %17 : vector<1x32xf32> to vector<1x32xf32>
    %19 = vector.broadcast %18 : vector<1x32xf32> to vector<2x32xf32>
    %cst_13 = arith.constant 0.000000e+00 : f32
    %20 = vector.broadcast %cst_13 : f32 to vector<2x32xf32>
    %cst_14 = arith.constant 0.000000e+00 : f32
    %21 = vector.broadcast %cst_14 : f32 to vector<2x32xf32>
    %cst_15 = arith.constant dense<0.000000e+00> : vector<2x96xf32>
    %22 = tpu.matmul %20, %12, %cst_15 {dimension_numbers = #tpu.dot_dimension_numbers<[1], [0], [0], [1], [0, 0, 1, 1], [], []>} : vector<2x32xf32>, vector<32x96xf32>, vector<2x96xf32> -> vector<2x96xf32>
    %cst_16 = arith.constant dense<0.000000e+00> : vector<2x96xf32>
    %23 = tpu.matmul %21, %13, %cst_16 {dimension_numbers = #tpu.dot_dimension_numbers<[1], [0], [0], [1], [0, 0, 1, 1], [], []>} : vector<2x32xf32>, vector<32x96xf32>, vector<2x96xf32> -> vector<2x96xf32>
    %24 = vector.extract_strided_slice %6 {offsets = [0, 0], sizes = [2, 32], strides = [1, 1]} : vector<16x32xf32> to vector<2x32xf32>
    %25 = vector.extract_strided_slice %22 {offsets = [0, 0], sizes = [2, 32], strides = [1, 1]} : vector<2x96xf32> to vector<2x32xf32>
    %26 = arith.addf %24, %25 : vector<2x32xf32>
    %27 = arith.negf %26 : vector<2x32xf32>
    %28 = math.exp %27 : vector<2x32xf32>
    %cst_17 = arith.constant 1.000000e+00 : f32
    %29 = vector.broadcast %cst_17 : f32 to vector<2x32xf32>
    %30 = arith.addf %29, %28 : vector<2x32xf32>
    %31 = arith.divf %29, %30 : vector<2x32xf32>
    %32 = vector.extract_strided_slice %9 {offsets = [14, 0], sizes = [2, 32], strides = [1, 1]} : vector<16x32xf32> to vector<2x32xf32>
    %33 = vector.extract_strided_slice %23 {offsets = [0, 0], sizes = [2, 32], strides = [1, 1]} : vector<2x96xf32> to vector<2x32xf32>
    %34 = arith.addf %32, %33 : vector<2x32xf32>
    %35 = arith.negf %34 : vector<2x32xf32>
    %36 = math.exp %35 : vector<2x32xf32>
    %cst_18 = arith.constant 1.000000e+00 : f32
    %37 = vector.broadcast %cst_18 : f32 to vector<2x32xf32>
    %38 = arith.addf %37, %36 : vector<2x32xf32>
    %39 = arith.divf %37, %38 : vector<2x32xf32>
    %40 = vector.extract_strided_slice %7 {offsets = [0, 0], sizes = [2, 32], strides = [1, 1]} : vector<16x32xf32> to vector<2x32xf32>
    %41 = vector.extract_strided_slice %22 {offsets = [0, 32], sizes = [2, 32], strides = [1, 1]} : vector<2x96xf32> to vector<2x32xf32>
    %42 = arith.addf %40, %41 : vector<2x32xf32>
    %43 = arith.negf %42 : vector<2x32xf32>
    %44 = math.exp %43 : vector<2x32xf32>
    %cst_19 = arith.constant 1.000000e+00 : f32
    %45 = vector.broadcast %cst_19 : f32 to vector<2x32xf32>
    %46 = arith.addf %45, %44 : vector<2x32xf32>
    %47 = arith.divf %45, %46 : vector<2x32xf32>
    %48 = vector.extract_strided_slice %10 {offsets = [14, 0], sizes = [2, 32], strides = [1, 1]} : vector<16x32xf32> to vector<2x32xf32>
    %49 = vector.extract_strided_slice %23 {offsets = [0, 32], sizes = [2, 32], strides = [1, 1]} : vector<2x96xf32> to vector<2x32xf32>
    %50 = arith.addf %48, %49 : vector<2x32xf32>
    %51 = arith.negf %50 : vector<2x32xf32>
    %52 = math.exp %51 : vector<2x32xf32>
    %cst_20 = arith.constant 1.000000e+00 : f32
    %53 = vector.broadcast %cst_20 : f32 to vector<2x32xf32>
    %54 = arith.addf %53, %52 : vector<2x32xf32>
    %55 = arith.divf %53, %54 : vector<2x32xf32>
    %56 = vector.extract_strided_slice %8 {offsets = [0, 0], sizes = [2, 32], strides = [1, 1]} : vector<16x32xf32> to vector<2x32xf32>
    %57 = vector.extract_strided_slice %22 {offsets = [0, 64], sizes = [2, 32], strides = [1, 1]} : vector<2x96xf32> to vector<2x32xf32>
    %58 = arith.addf %57, %16 : vector<2x32xf32>
    %59 = arith.mulf %31, %58 : vector<2x32xf32>
    %60 = arith.addf %56, %59 : vector<2x32xf32>
    %61 = math.tanh %60 : vector<2x32xf32>
    %62 = vector.extract_strided_slice %11 {offsets = [14, 0], sizes = [2, 32], strides = [1, 1]} : vector<16x32xf32> to vector<2x32xf32>
    %63 = vector.extract_strided_slice %23 {offsets = [0, 64], sizes = [2, 32], strides = [1, 1]} : vector<2x96xf32> to vector<2x32xf32>
    %64 = arith.addf %63, %19 : vector<2x32xf32>
    %65 = arith.mulf %39, %64 : vector<2x32xf32>
    %66 = arith.addf %62, %65 : vector<2x32xf32>
    %67 = math.tanh %66 : vector<2x32xf32>
    %cst_21 = arith.constant 1.000000e+00 : f32
    %68 = vector.broadcast %cst_21 : f32 to vector<2x32xf32>
    %69 = arith.subf %68, %47 : vector<2x32xf32>
    %70 = arith.mulf %69, %61 : vector<2x32xf32>
    %71 = arith.mulf %47, %20 : vector<2x32xf32>
    %72 = arith.addf %70, %71 : vector<2x32xf32>
    %cst_22 = arith.constant 1.000000e+00 : f32
    %73 = vector.broadcast %cst_22 : f32 to vector<2x32xf32>
    %74 = arith.subf %73, %55 : vector<2x32xf32>
    %75 = arith.mulf %74, %67 : vector<2x32xf32>
    %76 = arith.mulf %55, %21 : vector<2x32xf32>
    %77 = arith.addf %75, %76 : vector<2x32xf32>
    %cst_23 = arith.constant dense<0.000000e+00> : vector<2x96xf32>
    %78 = tpu.matmul %72, %12, %cst_23 {dimension_numbers = #tpu.dot_dimension_numbers<[1], [0], [0], [1], [0, 0, 1, 1], [], []>} : vector<2x32xf32>, vector<32x96xf32>, vector<2x96xf32> -> vector<2x96xf32>
    %cst_24 = arith.constant dense<0.000000e+00> : vector<2x96xf32>
    %79 = tpu.matmul %77, %13, %cst_24 {dimension_numbers = #tpu.dot_dimension_numbers<[1], [0], [0], [1], [0, 0, 1, 1], [], []>} : vector<2x32xf32>, vector<32x96xf32>, vector<2x96xf32> -> vector<2x96xf32>
    %80 = vector.extract_strided_slice %6 {offsets = [2, 0], sizes = [2, 32], strides = [1, 1]} : vector<16x32xf32> to vector<2x32xf32>
    %81 = vector.extract_strided_slice %78 {offsets = [0, 0], sizes = [2, 32], strides = [1, 1]} : vector<2x96xf32> to vector<2x32xf32>
    %82 = arith.addf %80, %81 : vector<2x32xf32>
    %83 = arith.negf %82 : vector<2x32xf32>
    %84 = math.exp %83 : vector<2x32xf32>
    %cst_25 = arith.constant 1.000000e+00 : f32
    %85 = vector.broadcast %cst_25 : f32 to vector<2x32xf32>
    %86 = arith.addf %85, %84 : vector<2x32xf32>
    %87 = arith.divf %85, %86 : vector<2x32xf32>
    %88 = vector.extract_strided_slice %9 {offsets = [12, 0], sizes = [2, 32], strides = [1, 1]} : vector<16x32xf32> to vector<2x32xf32>
    %89 = vector.extract_strided_slice %79 {offsets = [0, 0], sizes = [2, 32], strides = [1, 1]} : vector<2x96xf32> to vector<2x32xf32>
    %90 = arith.addf %88, %89 : vector<2x32xf32>
    %91 = arith.negf %90 : vector<2x32xf32>
    %92 = math.exp %91 : vector<2x32xf32>
    %cst_26 = arith.constant 1.000000e+00 : f32
    %93 = vector.broadcast %cst_26 : f32 to vector<2x32xf32>
    %94 = arith.addf %93, %92 : vector<2x32xf32>
    %95 = arith.divf %93, %94 : vector<2x32xf32>
    %96 = vector.extract_strided_slice %7 {offsets = [2, 0], sizes = [2, 32], strides = [1, 1]} : vector<16x32xf32> to vector<2x32xf32>
    %97 = vector.extract_strided_slice %78 {offsets = [0, 32], sizes = [2, 32], strides = [1, 1]} : vector<2x96xf32> to vector<2x32xf32>
    %98 = arith.addf %96, %97 : vector<2x32xf32>
    %99 = arith.negf %98 : vector<2x32xf32>
    %100 = math.exp %99 : vector<2x32xf32>
    %cst_27 = arith.constant 1.000000e+00 : f32
    %101 = vector.broadcast %cst_27 : f32 to vector<2x32xf32>
    %102 = arith.addf %101, %100 : vector<2x32xf32>
    %103 = arith.divf %101, %102 : vector<2x32xf32>
    %104 = vector.extract_strided_slice %10 {offsets = [12, 0], sizes = [2, 32], strides = [1, 1]} : vector<16x32xf32> to vector<2x32xf32>
    %105 = vector.extract_strided_slice %79 {offsets = [0, 32], sizes = [2, 32], strides = [1, 1]} : vector<2x96xf32> to vector<2x32xf32>
    %106 = arith.addf %104, %105 : vector<2x32xf32>
    %107 = arith.negf %106 : vector<2x32xf32>
    %108 = math.exp %107 : vector<2x32xf32>
    %cst_28 = arith.constant 1.000000e+00 : f32
    %109 = vector.broadcast %cst_28 : f32 to vector<2x32xf32>
    %110 = arith.addf %109, %108 : vector<2x32xf32>
    %111 = arith.divf %109, %110 : vector<2x32xf32>
    %112 = vector.extract_strided_slice %8 {offsets = [2, 0], sizes = [2, 32], strides = [1, 1]} : vector<16x32xf32> to vector<2x32xf32>
    %113 = vector.extract_strided_slice %78 {offsets = [0, 64], sizes = [2, 32], strides = [1, 1]} : vector<2x96xf32> to vector<2x32xf32>
    %114 = arith.addf %113, %16 : vector<2x32xf32>
    %115 = arith.mulf %87, %114 : vector<2x32xf32>
    %116 = arith.addf %112, %115 : vector<2x32xf32>
    %117 = math.tanh %116 : vector<2x32xf32>
    %118 = vector.extract_strided_slice %11 {offsets = [12, 0], sizes = [2, 32], strides = [1, 1]} : vector<16x32xf32> to vector<2x32xf32>
    %119 = vector.extract_strided_slice %79 {offsets = [0, 64], sizes = [2, 32], strides = [1, 1]} : vector<2x96xf32> to vector<2x32xf32>
    %120 = arith.addf %119, %19 : vector<2x32xf32>
    %121 = arith.mulf %95, %120 : vector<2x32xf32>
    %122 = arith.addf %118, %121 : vector<2x32xf32>
    %123 = math.tanh %122 : vector<2x32xf32>
    %cst_29 = arith.constant 1.000000e+00 : f32
    %124 = vector.broadcast %cst_29 : f32 to vector<2x32xf32>
    %125 = arith.subf %124, %103 : vector<2x32xf32>
    %126 = arith.mulf %125, %117 : vector<2x32xf32>
    %127 = arith.mulf %103, %72 : vector<2x32xf32>
    %128 = arith.addf %126, %127 : vector<2x32xf32>
    %cst_30 = arith.constant 1.000000e+00 : f32
    %129 = vector.broadcast %cst_30 : f32 to vector<2x32xf32>
    %130 = arith.subf %129, %111 : vector<2x32xf32>
    %131 = arith.mulf %130, %123 : vector<2x32xf32>
    %132 = arith.mulf %111, %77 : vector<2x32xf32>
    %133 = arith.addf %131, %132 : vector<2x32xf32>
    %cst_31 = arith.constant dense<0.000000e+00> : vector<2x96xf32>
    %134 = tpu.matmul %128, %12, %cst_31 {dimension_numbers = #tpu.dot_dimension_numbers<[1], [0], [0], [1], [0, 0, 1, 1], [], []>} : vector<2x32xf32>, vector<32x96xf32>, vector<2x96xf32> -> vector<2x96xf32>
    %cst_32 = arith.constant dense<0.000000e+00> : vector<2x96xf32>
    %135 = tpu.matmul %133, %13, %cst_32 {dimension_numbers = #tpu.dot_dimension_numbers<[1], [0], [0], [1], [0, 0, 1, 1], [], []>} : vector<2x32xf32>, vector<32x96xf32>, vector<2x96xf32> -> vector<2x96xf32>
    %136 = vector.extract_strided_slice %6 {offsets = [4, 0], sizes = [2, 32], strides = [1, 1]} : vector<16x32xf32> to vector<2x32xf32>
    %137 = vector.extract_strided_slice %134 {offsets = [0, 0], sizes = [2, 32], strides = [1, 1]} : vector<2x96xf32> to vector<2x32xf32>
    %138 = arith.addf %136, %137 : vector<2x32xf32>
    %139 = arith.negf %138 : vector<2x32xf32>
    %140 = math.exp %139 : vector<2x32xf32>
    %cst_33 = arith.constant 1.000000e+00 : f32
    %141 = vector.broadcast %cst_33 : f32 to vector<2x32xf32>
    %142 = arith.addf %141, %140 : vector<2x32xf32>
    %143 = arith.divf %141, %142 : vector<2x32xf32>
    %144 = vector.extract_strided_slice %9 {offsets = [10, 0], sizes = [2, 32], strides = [1, 1]} : vector<16x32xf32> to vector<2x32xf32>
    %145 = vector.extract_strided_slice %135 {offsets = [0, 0], sizes = [2, 32], strides = [1, 1]} : vector<2x96xf32> to vector<2x32xf32>
    %146 = arith.addf %144, %145 : vector<2x32xf32>
    %147 = arith.negf %146 : vector<2x32xf32>
    %148 = math.exp %147 : vector<2x32xf32>
    %cst_34 = arith.constant 1.000000e+00 : f32
    %149 = vector.broadcast %cst_34 : f32 to vector<2x32xf32>
    %150 = arith.addf %149, %148 : vector<2x32xf32>
    %151 = arith.divf %149, %150 : vector<2x32xf32>
    %152 = vector.extract_strided_slice %7 {offsets = [4, 0], sizes = [2, 32], strides = [1, 1]} : vector<16x32xf32> to vector<2x32xf32>
    %153 = vector.extract_strided_slice %134 {offsets = [0, 32], sizes = [2, 32], strides = [1, 1]} : vector<2x96xf32> to vector<2x32xf32>
    %154 = arith.addf %152, %153 : vector<2x32xf32>
    %155 = arith.negf %154 : vector<2x32xf32>
    %156 = math.exp %155 : vector<2x32xf32>
    %cst_35 = arith.constant 1.000000e+00 : f32
    %157 = vector.broadcast %cst_35 : f32 to vector<2x32xf32>
    %158 = arith.addf %157, %156 : vector<2x32xf32>
    %159 = arith.divf %157, %158 : vector<2x32xf32>
    %160 = vector.extract_strided_slice %10 {offsets = [10, 0], sizes = [2, 32], strides = [1, 1]} : vector<16x32xf32> to vector<2x32xf32>
    %161 = vector.extract_strided_slice %135 {offsets = [0, 32], sizes = [2, 32], strides = [1, 1]} : vector<2x96xf32> to vector<2x32xf32>
    %162 = arith.addf %160, %161 : vector<2x32xf32>
    %163 = arith.negf %162 : vector<2x32xf32>
    %164 = math.exp %163 : vector<2x32xf32>
    %cst_36 = arith.constant 1.000000e+00 : f32
    %165 = vector.broadcast %cst_36 : f32 to vector<2x32xf32>
    %166 = arith.addf %165, %164 : vector<2x32xf32>
    %167 = arith.divf %165, %166 : vector<2x32xf32>
    %168 = vector.extract_strided_slice %8 {offsets = [4, 0], sizes = [2, 32], strides = [1, 1]} : vector<16x32xf32> to vector<2x32xf32>
    %169 = vector.extract_strided_slice %134 {offsets = [0, 64], sizes = [2, 32], strides = [1, 1]} : vector<2x96xf32> to vector<2x32xf32>
    %170 = arith.addf %169, %16 : vector<2x32xf32>
    %171 = arith.mulf %143, %170 : vector<2x32xf32>
    %172 = arith.addf %168, %171 : vector<2x32xf32>
    %173 = math.tanh %172 : vector<2x32xf32>
    %174 = vector.extract_strided_slice %11 {offsets = [10, 0], sizes = [2, 32], strides = [1, 1]} : vector<16x32xf32> to vector<2x32xf32>
    %175 = vector.extract_strided_slice %135 {offsets = [0, 64], sizes = [2, 32], strides = [1, 1]} : vector<2x96xf32> to vector<2x32xf32>
    %176 = arith.addf %175, %19 : vector<2x32xf32>
    %177 = arith.mulf %151, %176 : vector<2x32xf32>
    %178 = arith.addf %174, %177 : vector<2x32xf32>
    %179 = math.tanh %178 : vector<2x32xf32>
    %cst_37 = arith.constant 1.000000e+00 : f32
    %180 = vector.broadcast %cst_37 : f32 to vector<2x32xf32>
    %181 = arith.subf %180, %159 : vector<2x32xf32>
    %182 = arith.mulf %181, %173 : vector<2x32xf32>
    %183 = arith.mulf %159, %128 : vector<2x32xf32>
    %184 = arith.addf %182, %183 : vector<2x32xf32>
    %cst_38 = arith.constant 1.000000e+00 : f32
    %185 = vector.broadcast %cst_38 : f32 to vector<2x32xf32>
    %186 = arith.subf %185, %167 : vector<2x32xf32>
    %187 = arith.mulf %186, %179 : vector<2x32xf32>
    %188 = arith.mulf %167, %133 : vector<2x32xf32>
    %189 = arith.addf %187, %188 : vector<2x32xf32>
    %cst_39 = arith.constant dense<0.000000e+00> : vector<2x96xf32>
    %190 = tpu.matmul %184, %12, %cst_39 {dimension_numbers = #tpu.dot_dimension_numbers<[1], [0], [0], [1], [0, 0, 1, 1], [], []>} : vector<2x32xf32>, vector<32x96xf32>, vector<2x96xf32> -> vector<2x96xf32>
    %cst_40 = arith.constant dense<0.000000e+00> : vector<2x96xf32>
    %191 = tpu.matmul %189, %13, %cst_40 {dimension_numbers = #tpu.dot_dimension_numbers<[1], [0], [0], [1], [0, 0, 1, 1], [], []>} : vector<2x32xf32>, vector<32x96xf32>, vector<2x96xf32> -> vector<2x96xf32>
    %192 = vector.extract_strided_slice %6 {offsets = [6, 0], sizes = [2, 32], strides = [1, 1]} : vector<16x32xf32> to vector<2x32xf32>
    %193 = vector.extract_strided_slice %190 {offsets = [0, 0], sizes = [2, 32], strides = [1, 1]} : vector<2x96xf32> to vector<2x32xf32>
    %194 = arith.addf %192, %193 : vector<2x32xf32>
    %195 = arith.negf %194 : vector<2x32xf32>
    %196 = math.exp %195 : vector<2x32xf32>
    %cst_41 = arith.constant 1.000000e+00 : f32
    %197 = vector.broadcast %cst_41 : f32 to vector<2x32xf32>
    %198 = arith.addf %197, %196 : vector<2x32xf32>
    %199 = arith.divf %197, %198 : vector<2x32xf32>
    %200 = vector.extract_strided_slice %9 {offsets = [8, 0], sizes = [2, 32], strides = [1, 1]} : vector<16x32xf32> to vector<2x32xf32>
    %201 = vector.extract_strided_slice %191 {offsets = [0, 0], sizes = [2, 32], strides = [1, 1]} : vector<2x96xf32> to vector<2x32xf32>
    %202 = arith.addf %200, %201 : vector<2x32xf32>
    %203 = arith.negf %202 : vector<2x32xf32>
    %204 = math.exp %203 : vector<2x32xf32>
    %cst_42 = arith.constant 1.000000e+00 : f32
    %205 = vector.broadcast %cst_42 : f32 to vector<2x32xf32>
    %206 = arith.addf %205, %204 : vector<2x32xf32>
    %207 = arith.divf %205, %206 : vector<2x32xf32>
    %208 = vector.extract_strided_slice %7 {offsets = [6, 0], sizes = [2, 32], strides = [1, 1]} : vector<16x32xf32> to vector<2x32xf32>
    %209 = vector.extract_strided_slice %190 {offsets = [0, 32], sizes = [2, 32], strides = [1, 1]} : vector<2x96xf32> to vector<2x32xf32>
    %210 = arith.addf %208, %209 : vector<2x32xf32>
    %211 = arith.negf %210 : vector<2x32xf32>
    %212 = math.exp %211 : vector<2x32xf32>
    %cst_43 = arith.constant 1.000000e+00 : f32
    %213 = vector.broadcast %cst_43 : f32 to vector<2x32xf32>
    %214 = arith.addf %213, %212 : vector<2x32xf32>
    %215 = arith.divf %213, %214 : vector<2x32xf32>
    %216 = vector.extract_strided_slice %10 {offsets = [8, 0], sizes = [2, 32], strides = [1, 1]} : vector<16x32xf32> to vector<2x32xf32>
    %217 = vector.extract_strided_slice %191 {offsets = [0, 32], sizes = [2, 32], strides = [1, 1]} : vector<2x96xf32> to vector<2x32xf32>
    %218 = arith.addf %216, %217 : vector<2x32xf32>
    %219 = arith.negf %218 : vector<2x32xf32>
    %220 = math.exp %219 : vector<2x32xf32>
    %cst_44 = arith.constant 1.000000e+00 : f32
    %221 = vector.broadcast %cst_44 : f32 to vector<2x32xf32>
    %222 = arith.addf %221, %220 : vector<2x32xf32>
    %223 = arith.divf %221, %222 : vector<2x32xf32>
    %224 = vector.extract_strided_slice %8 {offsets = [6, 0], sizes = [2, 32], strides = [1, 1]} : vector<16x32xf32> to vector<2x32xf32>
    %225 = vector.extract_strided_slice %190 {offsets = [0, 64], sizes = [2, 32], strides = [1, 1]} : vector<2x96xf32> to vector<2x32xf32>
    %226 = arith.addf %225, %16 : vector<2x32xf32>
    %227 = arith.mulf %199, %226 : vector<2x32xf32>
    %228 = arith.addf %224, %227 : vector<2x32xf32>
    %229 = math.tanh %228 : vector<2x32xf32>
    %230 = vector.extract_strided_slice %11 {offsets = [8, 0], sizes = [2, 32], strides = [1, 1]} : vector<16x32xf32> to vector<2x32xf32>
    %231 = vector.extract_strided_slice %191 {offsets = [0, 64], sizes = [2, 32], strides = [1, 1]} : vector<2x96xf32> to vector<2x32xf32>
    %232 = arith.addf %231, %19 : vector<2x32xf32>
    %233 = arith.mulf %207, %232 : vector<2x32xf32>
    %234 = arith.addf %230, %233 : vector<2x32xf32>
    %235 = math.tanh %234 : vector<2x32xf32>
    %cst_45 = arith.constant 1.000000e+00 : f32
    %236 = vector.broadcast %cst_45 : f32 to vector<2x32xf32>
    %237 = arith.subf %236, %215 : vector<2x32xf32>
    %238 = arith.mulf %237, %229 : vector<2x32xf32>
    %239 = arith.mulf %215, %184 : vector<2x32xf32>
    %240 = arith.addf %238, %239 : vector<2x32xf32>
    %cst_46 = arith.constant 1.000000e+00 : f32
    %241 = vector.broadcast %cst_46 : f32 to vector<2x32xf32>
    %242 = arith.subf %241, %223 : vector<2x32xf32>
    %243 = arith.mulf %242, %235 : vector<2x32xf32>
    %244 = arith.mulf %223, %189 : vector<2x32xf32>
    %245 = arith.addf %243, %244 : vector<2x32xf32>
    %cst_47 = arith.constant dense<0.000000e+00> : vector<2x96xf32>
    %246 = tpu.matmul %240, %12, %cst_47 {dimension_numbers = #tpu.dot_dimension_numbers<[1], [0], [0], [1], [0, 0, 1, 1], [], []>} : vector<2x32xf32>, vector<32x96xf32>, vector<2x96xf32> -> vector<2x96xf32>
    %cst_48 = arith.constant dense<0.000000e+00> : vector<2x96xf32>
    %247 = tpu.matmul %245, %13, %cst_48 {dimension_numbers = #tpu.dot_dimension_numbers<[1], [0], [0], [1], [0, 0, 1, 1], [], []>} : vector<2x32xf32>, vector<32x96xf32>, vector<2x96xf32> -> vector<2x96xf32>
    %248 = vector.extract_strided_slice %6 {offsets = [8, 0], sizes = [2, 32], strides = [1, 1]} : vector<16x32xf32> to vector<2x32xf32>
    %249 = vector.extract_strided_slice %246 {offsets = [0, 0], sizes = [2, 32], strides = [1, 1]} : vector<2x96xf32> to vector<2x32xf32>
    %250 = arith.addf %248, %249 : vector<2x32xf32>
    %251 = arith.negf %250 : vector<2x32xf32>
    %252 = math.exp %251 : vector<2x32xf32>
    %cst_49 = arith.constant 1.000000e+00 : f32
    %253 = vector.broadcast %cst_49 : f32 to vector<2x32xf32>
    %254 = arith.addf %253, %252 : vector<2x32xf32>
    %255 = arith.divf %253, %254 : vector<2x32xf32>
    %256 = vector.extract_strided_slice %9 {offsets = [6, 0], sizes = [2, 32], strides = [1, 1]} : vector<16x32xf32> to vector<2x32xf32>
    %257 = vector.extract_strided_slice %247 {offsets = [0, 0], sizes = [2, 32], strides = [1, 1]} : vector<2x96xf32> to vector<2x32xf32>
    %258 = arith.addf %256, %257 : vector<2x32xf32>
    %259 = arith.negf %258 : vector<2x32xf32>
    %260 = math.exp %259 : vector<2x32xf32>
    %cst_50 = arith.constant 1.000000e+00 : f32
    %261 = vector.broadcast %cst_50 : f32 to vector<2x32xf32>
    %262 = arith.addf %261, %260 : vector<2x32xf32>
    %263 = arith.divf %261, %262 : vector<2x32xf32>
    %264 = vector.extract_strided_slice %7 {offsets = [8, 0], sizes = [2, 32], strides = [1, 1]} : vector<16x32xf32> to vector<2x32xf32>
    %265 = vector.extract_strided_slice %246 {offsets = [0, 32], sizes = [2, 32], strides = [1, 1]} : vector<2x96xf32> to vector<2x32xf32>
    %266 = arith.addf %264, %265 : vector<2x32xf32>
    %267 = arith.negf %266 : vector<2x32xf32>
    %268 = math.exp %267 : vector<2x32xf32>
    %cst_51 = arith.constant 1.000000e+00 : f32
    %269 = vector.broadcast %cst_51 : f32 to vector<2x32xf32>
    %270 = arith.addf %269, %268 : vector<2x32xf32>
    %271 = arith.divf %269, %270 : vector<2x32xf32>
    %272 = vector.extract_strided_slice %10 {offsets = [6, 0], sizes = [2, 32], strides = [1, 1]} : vector<16x32xf32> to vector<2x32xf32>
    %273 = vector.extract_strided_slice %247 {offsets = [0, 32], sizes = [2, 32], strides = [1, 1]} : vector<2x96xf32> to vector<2x32xf32>
    %274 = arith.addf %272, %273 : vector<2x32xf32>
    %275 = arith.negf %274 : vector<2x32xf32>
    %276 = math.exp %275 : vector<2x32xf32>
    %cst_52 = arith.constant 1.000000e+00 : f32
    %277 = vector.broadcast %cst_52 : f32 to vector<2x32xf32>
    %278 = arith.addf %277, %276 : vector<2x32xf32>
    %279 = arith.divf %277, %278 : vector<2x32xf32>
    %280 = vector.extract_strided_slice %8 {offsets = [8, 0], sizes = [2, 32], strides = [1, 1]} : vector<16x32xf32> to vector<2x32xf32>
    %281 = vector.extract_strided_slice %246 {offsets = [0, 64], sizes = [2, 32], strides = [1, 1]} : vector<2x96xf32> to vector<2x32xf32>
    %282 = arith.addf %281, %16 : vector<2x32xf32>
    %283 = arith.mulf %255, %282 : vector<2x32xf32>
    %284 = arith.addf %280, %283 : vector<2x32xf32>
    %285 = math.tanh %284 : vector<2x32xf32>
    %286 = vector.extract_strided_slice %11 {offsets = [6, 0], sizes = [2, 32], strides = [1, 1]} : vector<16x32xf32> to vector<2x32xf32>
    %287 = vector.extract_strided_slice %247 {offsets = [0, 64], sizes = [2, 32], strides = [1, 1]} : vector<2x96xf32> to vector<2x32xf32>
    %288 = arith.addf %287, %19 : vector<2x32xf32>
    %289 = arith.mulf %263, %288 : vector<2x32xf32>
    %290 = arith.addf %286, %289 : vector<2x32xf32>
    %291 = math.tanh %290 : vector<2x32xf32>
    %cst_53 = arith.constant 1.000000e+00 : f32
    %292 = vector.broadcast %cst_53 : f32 to vector<2x32xf32>
    %293 = arith.subf %292, %271 : vector<2x32xf32>
    %294 = arith.mulf %293, %285 : vector<2x32xf32>
    %295 = arith.mulf %271, %240 : vector<2x32xf32>
    %296 = arith.addf %294, %295 : vector<2x32xf32>
    %cst_54 = arith.constant 1.000000e+00 : f32
    %297 = vector.broadcast %cst_54 : f32 to vector<2x32xf32>
    %298 = arith.subf %297, %279 : vector<2x32xf32>
    %299 = arith.mulf %298, %291 : vector<2x32xf32>
    %300 = arith.mulf %279, %245 : vector<2x32xf32>
    %301 = arith.addf %299, %300 : vector<2x32xf32>
    %cst_55 = arith.constant dense<0.000000e+00> : vector<2x96xf32>
    %302 = tpu.matmul %296, %12, %cst_55 {dimension_numbers = #tpu.dot_dimension_numbers<[1], [0], [0], [1], [0, 0, 1, 1], [], []>} : vector<2x32xf32>, vector<32x96xf32>, vector<2x96xf32> -> vector<2x96xf32>
    %cst_56 = arith.constant dense<0.000000e+00> : vector<2x96xf32>
    %303 = tpu.matmul %301, %13, %cst_56 {dimension_numbers = #tpu.dot_dimension_numbers<[1], [0], [0], [1], [0, 0, 1, 1], [], []>} : vector<2x32xf32>, vector<32x96xf32>, vector<2x96xf32> -> vector<2x96xf32>
    %304 = vector.extract_strided_slice %6 {offsets = [10, 0], sizes = [2, 32], strides = [1, 1]} : vector<16x32xf32> to vector<2x32xf32>
    %305 = vector.extract_strided_slice %302 {offsets = [0, 0], sizes = [2, 32], strides = [1, 1]} : vector<2x96xf32> to vector<2x32xf32>
    %306 = arith.addf %304, %305 : vector<2x32xf32>
    %307 = arith.negf %306 : vector<2x32xf32>
    %308 = math.exp %307 : vector<2x32xf32>
    %cst_57 = arith.constant 1.000000e+00 : f32
    %309 = vector.broadcast %cst_57 : f32 to vector<2x32xf32>
    %310 = arith.addf %309, %308 : vector<2x32xf32>
    %311 = arith.divf %309, %310 : vector<2x32xf32>
    %312 = vector.extract_strided_slice %9 {offsets = [4, 0], sizes = [2, 32], strides = [1, 1]} : vector<16x32xf32> to vector<2x32xf32>
    %313 = vector.extract_strided_slice %303 {offsets = [0, 0], sizes = [2, 32], strides = [1, 1]} : vector<2x96xf32> to vector<2x32xf32>
    %314 = arith.addf %312, %313 : vector<2x32xf32>
    %315 = arith.negf %314 : vector<2x32xf32>
    %316 = math.exp %315 : vector<2x32xf32>
    %cst_58 = arith.constant 1.000000e+00 : f32
    %317 = vector.broadcast %cst_58 : f32 to vector<2x32xf32>
    %318 = arith.addf %317, %316 : vector<2x32xf32>
    %319 = arith.divf %317, %318 : vector<2x32xf32>
    %320 = vector.extract_strided_slice %7 {offsets = [10, 0], sizes = [2, 32], strides = [1, 1]} : vector<16x32xf32> to vector<2x32xf32>
    %321 = vector.extract_strided_slice %302 {offsets = [0, 32], sizes = [2, 32], strides = [1, 1]} : vector<2x96xf32> to vector<2x32xf32>
    %322 = arith.addf %320, %321 : vector<2x32xf32>
    %323 = arith.negf %322 : vector<2x32xf32>
    %324 = math.exp %323 : vector<2x32xf32>
    %cst_59 = arith.constant 1.000000e+00 : f32
    %325 = vector.broadcast %cst_59 : f32 to vector<2x32xf32>
    %326 = arith.addf %325, %324 : vector<2x32xf32>
    %327 = arith.divf %325, %326 : vector<2x32xf32>
    %328 = vector.extract_strided_slice %10 {offsets = [4, 0], sizes = [2, 32], strides = [1, 1]} : vector<16x32xf32> to vector<2x32xf32>
    %329 = vector.extract_strided_slice %303 {offsets = [0, 32], sizes = [2, 32], strides = [1, 1]} : vector<2x96xf32> to vector<2x32xf32>
    %330 = arith.addf %328, %329 : vector<2x32xf32>
    %331 = arith.negf %330 : vector<2x32xf32>
    %332 = math.exp %331 : vector<2x32xf32>
    %cst_60 = arith.constant 1.000000e+00 : f32
    %333 = vector.broadcast %cst_60 : f32 to vector<2x32xf32>
    %334 = arith.addf %333, %332 : vector<2x32xf32>
    %335 = arith.divf %333, %334 : vector<2x32xf32>
    %336 = vector.extract_strided_slice %8 {offsets = [10, 0], sizes = [2, 32], strides = [1, 1]} : vector<16x32xf32> to vector<2x32xf32>
    %337 = vector.extract_strided_slice %302 {offsets = [0, 64], sizes = [2, 32], strides = [1, 1]} : vector<2x96xf32> to vector<2x32xf32>
    %338 = arith.addf %337, %16 : vector<2x32xf32>
    %339 = arith.mulf %311, %338 : vector<2x32xf32>
    %340 = arith.addf %336, %339 : vector<2x32xf32>
    %341 = math.tanh %340 : vector<2x32xf32>
    %342 = vector.extract_strided_slice %11 {offsets = [4, 0], sizes = [2, 32], strides = [1, 1]} : vector<16x32xf32> to vector<2x32xf32>
    %343 = vector.extract_strided_slice %303 {offsets = [0, 64], sizes = [2, 32], strides = [1, 1]} : vector<2x96xf32> to vector<2x32xf32>
    %344 = arith.addf %343, %19 : vector<2x32xf32>
    %345 = arith.mulf %319, %344 : vector<2x32xf32>
    %346 = arith.addf %342, %345 : vector<2x32xf32>
    %347 = math.tanh %346 : vector<2x32xf32>
    %cst_61 = arith.constant 1.000000e+00 : f32
    %348 = vector.broadcast %cst_61 : f32 to vector<2x32xf32>
    %349 = arith.subf %348, %327 : vector<2x32xf32>
    %350 = arith.mulf %349, %341 : vector<2x32xf32>
    %351 = arith.mulf %327, %296 : vector<2x32xf32>
    %352 = arith.addf %350, %351 : vector<2x32xf32>
    %cst_62 = arith.constant 1.000000e+00 : f32
    %353 = vector.broadcast %cst_62 : f32 to vector<2x32xf32>
    %354 = arith.subf %353, %335 : vector<2x32xf32>
    %355 = arith.mulf %354, %347 : vector<2x32xf32>
    %356 = arith.mulf %335, %301 : vector<2x32xf32>
    %357 = arith.addf %355, %356 : vector<2x32xf32>
    %cst_63 = arith.constant dense<0.000000e+00> : vector<2x96xf32>
    %358 = tpu.matmul %352, %12, %cst_63 {dimension_numbers = #tpu.dot_dimension_numbers<[1], [0], [0], [1], [0, 0, 1, 1], [], []>} : vector<2x32xf32>, vector<32x96xf32>, vector<2x96xf32> -> vector<2x96xf32>
    %cst_64 = arith.constant dense<0.000000e+00> : vector<2x96xf32>
    %359 = tpu.matmul %357, %13, %cst_64 {dimension_numbers = #tpu.dot_dimension_numbers<[1], [0], [0], [1], [0, 0, 1, 1], [], []>} : vector<2x32xf32>, vector<32x96xf32>, vector<2x96xf32> -> vector<2x96xf32>
    %360 = vector.extract_strided_slice %6 {offsets = [12, 0], sizes = [2, 32], strides = [1, 1]} : vector<16x32xf32> to vector<2x32xf32>
    %361 = vector.extract_strided_slice %358 {offsets = [0, 0], sizes = [2, 32], strides = [1, 1]} : vector<2x96xf32> to vector<2x32xf32>
    %362 = arith.addf %360, %361 : vector<2x32xf32>
    %363 = arith.negf %362 : vector<2x32xf32>
    %364 = math.exp %363 : vector<2x32xf32>
    %cst_65 = arith.constant 1.000000e+00 : f32
    %365 = vector.broadcast %cst_65 : f32 to vector<2x32xf32>
    %366 = arith.addf %365, %364 : vector<2x32xf32>
    %367 = arith.divf %365, %366 : vector<2x32xf32>
    %368 = vector.extract_strided_slice %9 {offsets = [2, 0], sizes = [2, 32], strides = [1, 1]} : vector<16x32xf32> to vector<2x32xf32>
    %369 = vector.extract_strided_slice %359 {offsets = [0, 0], sizes = [2, 32], strides = [1, 1]} : vector<2x96xf32> to vector<2x32xf32>
    %370 = arith.addf %368, %369 : vector<2x32xf32>
    %371 = arith.negf %370 : vector<2x32xf32>
    %372 = math.exp %371 : vector<2x32xf32>
    %cst_66 = arith.constant 1.000000e+00 : f32
    %373 = vector.broadcast %cst_66 : f32 to vector<2x32xf32>
    %374 = arith.addf %373, %372 : vector<2x32xf32>
    %375 = arith.divf %373, %374 : vector<2x32xf32>
    %376 = vector.extract_strided_slice %7 {offsets = [12, 0], sizes = [2, 32], strides = [1, 1]} : vector<16x32xf32> to vector<2x32xf32>
    %377 = vector.extract_strided_slice %358 {offsets = [0, 32], sizes = [2, 32], strides = [1, 1]} : vector<2x96xf32> to vector<2x32xf32>
    %378 = arith.addf %376, %377 : vector<2x32xf32>
    %379 = arith.negf %378 : vector<2x32xf32>
    %380 = math.exp %379 : vector<2x32xf32>
    %cst_67 = arith.constant 1.000000e+00 : f32
    %381 = vector.broadcast %cst_67 : f32 to vector<2x32xf32>
    %382 = arith.addf %381, %380 : vector<2x32xf32>
    %383 = arith.divf %381, %382 : vector<2x32xf32>
    %384 = vector.extract_strided_slice %10 {offsets = [2, 0], sizes = [2, 32], strides = [1, 1]} : vector<16x32xf32> to vector<2x32xf32>
    %385 = vector.extract_strided_slice %359 {offsets = [0, 32], sizes = [2, 32], strides = [1, 1]} : vector<2x96xf32> to vector<2x32xf32>
    %386 = arith.addf %384, %385 : vector<2x32xf32>
    %387 = arith.negf %386 : vector<2x32xf32>
    %388 = math.exp %387 : vector<2x32xf32>
    %cst_68 = arith.constant 1.000000e+00 : f32
    %389 = vector.broadcast %cst_68 : f32 to vector<2x32xf32>
    %390 = arith.addf %389, %388 : vector<2x32xf32>
    %391 = arith.divf %389, %390 : vector<2x32xf32>
    %392 = vector.extract_strided_slice %8 {offsets = [12, 0], sizes = [2, 32], strides = [1, 1]} : vector<16x32xf32> to vector<2x32xf32>
    %393 = vector.extract_strided_slice %358 {offsets = [0, 64], sizes = [2, 32], strides = [1, 1]} : vector<2x96xf32> to vector<2x32xf32>
    %394 = arith.addf %393, %16 : vector<2x32xf32>
    %395 = arith.mulf %367, %394 : vector<2x32xf32>
    %396 = arith.addf %392, %395 : vector<2x32xf32>
    %397 = math.tanh %396 : vector<2x32xf32>
    %398 = vector.extract_strided_slice %11 {offsets = [2, 0], sizes = [2, 32], strides = [1, 1]} : vector<16x32xf32> to vector<2x32xf32>
    %399 = vector.extract_strided_slice %359 {offsets = [0, 64], sizes = [2, 32], strides = [1, 1]} : vector<2x96xf32> to vector<2x32xf32>
    %400 = arith.addf %399, %19 : vector<2x32xf32>
    %401 = arith.mulf %375, %400 : vector<2x32xf32>
    %402 = arith.addf %398, %401 : vector<2x32xf32>
    %403 = math.tanh %402 : vector<2x32xf32>
    %cst_69 = arith.constant 1.000000e+00 : f32
    %404 = vector.broadcast %cst_69 : f32 to vector<2x32xf32>
    %405 = arith.subf %404, %383 : vector<2x32xf32>
    %406 = arith.mulf %405, %397 : vector<2x32xf32>
    %407 = arith.mulf %383, %352 : vector<2x32xf32>
    %408 = arith.addf %406, %407 : vector<2x32xf32>
    %cst_70 = arith.constant 1.000000e+00 : f32
    %409 = vector.broadcast %cst_70 : f32 to vector<2x32xf32>
    %410 = arith.subf %409, %391 : vector<2x32xf32>
    %411 = arith.mulf %410, %403 : vector<2x32xf32>
    %412 = arith.mulf %391, %357 : vector<2x32xf32>
    %413 = arith.addf %411, %412 : vector<2x32xf32>
    %cst_71 = arith.constant dense<0.000000e+00> : vector<2x96xf32>
    %414 = tpu.matmul %408, %12, %cst_71 {dimension_numbers = #tpu.dot_dimension_numbers<[1], [0], [0], [1], [0, 0, 1, 1], [], []>} : vector<2x32xf32>, vector<32x96xf32>, vector<2x96xf32> -> vector<2x96xf32>
    %cst_72 = arith.constant dense<0.000000e+00> : vector<2x96xf32>
    %415 = tpu.matmul %413, %13, %cst_72 {dimension_numbers = #tpu.dot_dimension_numbers<[1], [0], [0], [1], [0, 0, 1, 1], [], []>} : vector<2x32xf32>, vector<32x96xf32>, vector<2x96xf32> -> vector<2x96xf32>
    %416 = vector.extract_strided_slice %6 {offsets = [14, 0], sizes = [2, 32], strides = [1, 1]} : vector<16x32xf32> to vector<2x32xf32>
    %417 = vector.extract_strided_slice %414 {offsets = [0, 0], sizes = [2, 32], strides = [1, 1]} : vector<2x96xf32> to vector<2x32xf32>
    %418 = arith.addf %416, %417 : vector<2x32xf32>
    %419 = arith.negf %418 : vector<2x32xf32>
    %420 = math.exp %419 : vector<2x32xf32>
    %cst_73 = arith.constant 1.000000e+00 : f32
    %421 = vector.broadcast %cst_73 : f32 to vector<2x32xf32>
    %422 = arith.addf %421, %420 : vector<2x32xf32>
    %423 = arith.divf %421, %422 : vector<2x32xf32>
    %424 = vector.extract_strided_slice %9 {offsets = [0, 0], sizes = [2, 32], strides = [1, 1]} : vector<16x32xf32> to vector<2x32xf32>
    %425 = vector.extract_strided_slice %415 {offsets = [0, 0], sizes = [2, 32], strides = [1, 1]} : vector<2x96xf32> to vector<2x32xf32>
    %426 = arith.addf %424, %425 : vector<2x32xf32>
    %427 = arith.negf %426 : vector<2x32xf32>
    %428 = math.exp %427 : vector<2x32xf32>
    %cst_74 = arith.constant 1.000000e+00 : f32
    %429 = vector.broadcast %cst_74 : f32 to vector<2x32xf32>
    %430 = arith.addf %429, %428 : vector<2x32xf32>
    %431 = arith.divf %429, %430 : vector<2x32xf32>
    %432 = vector.extract_strided_slice %7 {offsets = [14, 0], sizes = [2, 32], strides = [1, 1]} : vector<16x32xf32> to vector<2x32xf32>
    %433 = vector.extract_strided_slice %414 {offsets = [0, 32], sizes = [2, 32], strides = [1, 1]} : vector<2x96xf32> to vector<2x32xf32>
    %434 = arith.addf %432, %433 : vector<2x32xf32>
    %435 = arith.negf %434 : vector<2x32xf32>
    %436 = math.exp %435 : vector<2x32xf32>
    %cst_75 = arith.constant 1.000000e+00 : f32
    %437 = vector.broadcast %cst_75 : f32 to vector<2x32xf32>
    %438 = arith.addf %437, %436 : vector<2x32xf32>
    %439 = arith.divf %437, %438 : vector<2x32xf32>
    %440 = vector.extract_strided_slice %10 {offsets = [0, 0], sizes = [2, 32], strides = [1, 1]} : vector<16x32xf32> to vector<2x32xf32>
    %441 = vector.extract_strided_slice %415 {offsets = [0, 32], sizes = [2, 32], strides = [1, 1]} : vector<2x96xf32> to vector<2x32xf32>
    %442 = arith.addf %440, %441 : vector<2x32xf32>
    %443 = arith.negf %442 : vector<2x32xf32>
    %444 = math.exp %443 : vector<2x32xf32>
    %cst_76 = arith.constant 1.000000e+00 : f32
    %445 = vector.broadcast %cst_76 : f32 to vector<2x32xf32>
    %446 = arith.addf %445, %444 : vector<2x32xf32>
    %447 = arith.divf %445, %446 : vector<2x32xf32>
    %448 = vector.extract_strided_slice %8 {offsets = [14, 0], sizes = [2, 32], strides = [1, 1]} : vector<16x32xf32> to vector<2x32xf32>
    %449 = vector.extract_strided_slice %414 {offsets = [0, 64], sizes = [2, 32], strides = [1, 1]} : vector<2x96xf32> to vector<2x32xf32>
    %450 = arith.addf %449, %16 : vector<2x32xf32>
    %451 = arith.mulf %423, %450 : vector<2x32xf32>
    %452 = arith.addf %448, %451 : vector<2x32xf32>
    %453 = math.tanh %452 : vector<2x32xf32>
    %454 = vector.extract_strided_slice %11 {offsets = [0, 0], sizes = [2, 32], strides = [1, 1]} : vector<16x32xf32> to vector<2x32xf32>
    %455 = vector.extract_strided_slice %415 {offsets = [0, 64], sizes = [2, 32], strides = [1, 1]} : vector<2x96xf32> to vector<2x32xf32>
    %456 = arith.addf %455, %19 : vector<2x32xf32>
    %457 = arith.mulf %431, %456 : vector<2x32xf32>
    %458 = arith.addf %454, %457 : vector<2x32xf32>
    %459 = math.tanh %458 : vector<2x32xf32>
    %cst_77 = arith.constant 1.000000e+00 : f32
    %460 = vector.broadcast %cst_77 : f32 to vector<2x32xf32>
    %461 = arith.subf %460, %439 : vector<2x32xf32>
    %462 = arith.mulf %461, %453 : vector<2x32xf32>
    %463 = arith.mulf %439, %408 : vector<2x32xf32>
    %464 = arith.addf %462, %463 : vector<2x32xf32>
    %cst_78 = arith.constant 1.000000e+00 : f32
    %465 = vector.broadcast %cst_78 : f32 to vector<2x32xf32>
    %466 = arith.subf %465, %447 : vector<2x32xf32>
    %467 = arith.mulf %466, %459 : vector<2x32xf32>
    %468 = arith.mulf %447, %413 : vector<2x32xf32>
    %469 = arith.addf %467, %468 : vector<2x32xf32>
    %470 = arith.addf %72, %469 : vector<2x32xf32>
    %471 = arith.addf %128, %413 : vector<2x32xf32>
    %472 = arith.addf %184, %357 : vector<2x32xf32>
    %473 = arith.addf %240, %301 : vector<2x32xf32>
    %474 = arith.addf %296, %245 : vector<2x32xf32>
    %475 = arith.addf %352, %189 : vector<2x32xf32>
    %476 = arith.addf %408, %133 : vector<2x32xf32>
    %477 = arith.addf %464, %77 : vector<2x32xf32>
    %c0_79 = arith.constant 0 : index
    %c0_80 = arith.constant 0 : index
    %478 = vector.load %arg17[%c0_79, %c0_80] : memref<16x32xf32, #tpu.memory_space<vmem>>, vector<2x32xf32>
    tpu.vector_store %arg17[%c0_79, %c0_80], %470 {strides = array<i32>} : memref<16x32xf32, #tpu.memory_space<vmem>>, vector<2x32xf32>,
    %c2 = arith.constant 2 : index
    %c0_81 = arith.constant 0 : index
    %479 = vector.load %arg17[%c2, %c0_81] : memref<16x32xf32, #tpu.memory_space<vmem>>, vector<2x32xf32>
    tpu.vector_store %arg17[%c2, %c0_81], %471 {strides = array<i32>} : memref<16x32xf32, #tpu.memory_space<vmem>>, vector<2x32xf32>,
    %c4 = arith.constant 4 : index
    %c0_82 = arith.constant 0 : index
    %480 = vector.load %arg17[%c4, %c0_82] : memref<16x32xf32, #tpu.memory_space<vmem>>, vector<2x32xf32>
    tpu.vector_store %arg17[%c4, %c0_82], %472 {strides = array<i32>} : memref<16x32xf32, #tpu.memory_space<vmem>>, vector<2x32xf32>,
    %c6 = arith.constant 6 : index
    %c0_83 = arith.constant 0 : index
    %481 = vector.load %arg17[%c6, %c0_83] : memref<16x32xf32, #tpu.memory_space<vmem>>, vector<2x32xf32>
    tpu.vector_store %arg17[%c6, %c0_83], %473 {strides = array<i32>} : memref<16x32xf32, #tpu.memory_space<vmem>>, vector<2x32xf32>,
    %c8 = arith.constant 8 : index
    %c0_84 = arith.constant 0 : index
    %482 = vector.load %arg17[%c8, %c0_84] : memref<16x32xf32, #tpu.memory_space<vmem>>, vector<2x32xf32>
    tpu.vector_store %arg17[%c8, %c0_84], %474 {strides = array<i32>} : memref<16x32xf32, #tpu.memory_space<vmem>>, vector<2x32xf32>,
    %c10 = arith.constant 10 : index
    %c0_85 = arith.constant 0 : index
    %483 = vector.load %arg17[%c10, %c0_85] : memref<16x32xf32, #tpu.memory_space<vmem>>, vector<2x32xf32>
    tpu.vector_store %arg17[%c10, %c0_85], %475 {strides = array<i32>} : memref<16x32xf32, #tpu.memory_space<vmem>>, vector<2x32xf32>,
    %c12 = arith.constant 12 : index
    %c0_86 = arith.constant 0 : index
    %484 = vector.load %arg17[%c12, %c0_86] : memref<16x32xf32, #tpu.memory_space<vmem>>, vector<2x32xf32>
    tpu.vector_store %arg17[%c12, %c0_86], %476 {strides = array<i32>} : memref<16x32xf32, #tpu.memory_space<vmem>>, vector<2x32xf32>,
    %c14 = arith.constant 14 : index
    %c0_87 = arith.constant 0 : index
    %485 = vector.load %arg17[%c14, %c0_87] : memref<16x32xf32, #tpu.memory_space<vmem>>, vector<2x32xf32>
    tpu.vector_store %arg17[%c14, %c0_87], %477 {strides = array<i32>} : memref<16x32xf32, #tpu.memory_space<vmem>>, vector<2x32xf32>,
    %c0_88 = arith.constant 0 : index
    %c0_89 = arith.constant 0 : index
    %486 = vector.load %arg17[%c0_88, %c0_89] : memref<16x32xf32, #tpu.memory_space<vmem>>, vector<16x32xf32>
    %c0_90 = arith.constant 0 : index
    %c0_91 = arith.constant 0 : index
    %487 = vector.load %arg7[%c0_90, %c0_91] : memref<32x32xf32, #tpu.memory_space<vmem>>, vector<32x32xf32>
    %cst_92 = arith.constant dense<0.000000e+00> : vector<16x32xf32>
    %488 = tpu.matmul %486, %487, %cst_92 {dimension_numbers = #tpu.dot_dimension_numbers<[1], [0], [0], [1], [0, 0, 1, 1], [], []>} : vector<16x32xf32>, vector<32x32xf32>, vector<16x32xf32> -> vector<16x32xf32>
    %c0_93 = arith.constant 0 : index
    %c0_94 = arith.constant 0 : index
    %489 = vector.load %arg8[%c0_93, %c0_94] : memref<1x32xf32, #tpu.memory_space<vmem>>, vector<1x32xf32>
    %490 = vector.broadcast %489 : vector<1x32xf32> to vector<16x32xf32>
    %491 = arith.addf %488, %490 : vector<16x32xf32>
    %492 = math.tanh %491 : vector<16x32xf32>
    %c0_95 = arith.constant 0 : index
    %c0_96 = arith.constant 0 : index
    %493 = vector.load %arg9[%c0_95, %c0_96] : memref<32x32xf32, #tpu.memory_space<vmem>>, vector<32x32xf32>
    %cst_97 = arith.constant dense<0.000000e+00> : vector<16x32xf32>
    %494 = tpu.matmul %492, %493, %cst_97 {dimension_numbers = #tpu.dot_dimension_numbers<[1], [0], [0], [1], [0, 0, 1, 1], [], []>} : vector<16x32xf32>, vector<32x32xf32>, vector<16x32xf32> -> vector<16x32xf32>
    %495 = vector.extract_strided_slice %494 {offsets = [0, 0], sizes = [2, 32], strides = [1, 1]} : vector<16x32xf32> to vector<2x32xf32>
    %496 = vector.extract_strided_slice %494 {offsets = [2, 0], sizes = [2, 32], strides = [1, 1]} : vector<16x32xf32> to vector<2x32xf32>
    %497 = vector.extract_strided_slice %494 {offsets = [4, 0], sizes = [2, 32], strides = [1, 1]} : vector<16x32xf32> to vector<2x32xf32>
    %498 = vector.extract_strided_slice %494 {offsets = [6, 0], sizes = [2, 32], strides = [1, 1]} : vector<16x32xf32> to vector<2x32xf32>
    %499 = vector.extract_strided_slice %494 {offsets = [8, 0], sizes = [2, 32], strides = [1, 1]} : vector<16x32xf32> to vector<2x32xf32>
    %500 = vector.extract_strided_slice %494 {offsets = [10, 0], sizes = [2, 32], strides = [1, 1]} : vector<16x32xf32> to vector<2x32xf32>
    %501 = vector.extract_strided_slice %494 {offsets = [12, 0], sizes = [2, 32], strides = [1, 1]} : vector<16x32xf32> to vector<2x32xf32>
    %502 = vector.extract_strided_slice %494 {offsets = [14, 0], sizes = [2, 32], strides = [1, 1]} : vector<16x32xf32> to vector<2x32xf32>
    %503 = arith.maximumf %495, %496 : vector<2x32xf32>
    %504 = arith.maximumf %503, %497 : vector<2x32xf32>
    %505 = arith.maximumf %504, %498 : vector<2x32xf32>
    %506 = arith.maximumf %505, %499 : vector<2x32xf32>
    %507 = arith.maximumf %506, %500 : vector<2x32xf32>
    %508 = arith.maximumf %507, %501 : vector<2x32xf32>
    %509 = arith.maximumf %508, %502 : vector<2x32xf32>
    %510 = arith.subf %495, %509 : vector<2x32xf32>
    %511 = math.exp %510 : vector<2x32xf32>
    %512 = arith.subf %496, %509 : vector<2x32xf32>
    %513 = math.exp %512 : vector<2x32xf32>
    %514 = arith.subf %497, %509 : vector<2x32xf32>
    %515 = math.exp %514 : vector<2x32xf32>
    %516 = arith.subf %498, %509 : vector<2x32xf32>
    %517 = math.exp %516 : vector<2x32xf32>
    %518 = arith.subf %499, %509 : vector<2x32xf32>
    %519 = math.exp %518 : vector<2x32xf32>
    %520 = arith.subf %500, %509 : vector<2x32xf32>
    %521 = math.exp %520 : vector<2x32xf32>
    %522 = arith.subf %501, %509 : vector<2x32xf32>
    %523 = math.exp %522 : vector<2x32xf32>
    %524 = arith.subf %502, %509 : vector<2x32xf32>
    %525 = math.exp %524 : vector<2x32xf32>
    %526 = arith.addf %511, %513 : vector<2x32xf32>
    %527 = arith.addf %526, %515 : vector<2x32xf32>
    %528 = arith.addf %527, %517 : vector<2x32xf32>
    %529 = arith.addf %528, %519 : vector<2x32xf32>
    %530 = arith.addf %529, %521 : vector<2x32xf32>
    %531 = arith.addf %530, %523 : vector<2x32xf32>
    %532 = arith.addf %531, %525 : vector<2x32xf32>
    %533 = tpu.reciprocal %532 {approx = true} : vector<2x32xf32> -> vector<2x32xf32>
    %534 = arith.mulf %511, %470 : vector<2x32xf32>
    %535 = arith.mulf %513, %471 : vector<2x32xf32>
    %536 = arith.addf %534, %535 : vector<2x32xf32>
    %537 = arith.mulf %515, %472 : vector<2x32xf32>
    %538 = arith.addf %536, %537 : vector<2x32xf32>
    %539 = arith.mulf %517, %473 : vector<2x32xf32>
    %540 = arith.addf %538, %539 : vector<2x32xf32>
    %541 = arith.mulf %519, %474 : vector<2x32xf32>
    %542 = arith.addf %540, %541 : vector<2x32xf32>
    %543 = arith.mulf %521, %475 : vector<2x32xf32>
    %544 = arith.addf %542, %543 : vector<2x32xf32>
    %545 = arith.mulf %523, %476 : vector<2x32xf32>
    %546 = arith.addf %544, %545 : vector<2x32xf32>
    %547 = arith.mulf %525, %477 : vector<2x32xf32>
    %548 = arith.addf %546, %547 : vector<2x32xf32>
    %549 = arith.mulf %548, %533 : vector<2x32xf32>
    %c0_98 = arith.constant 0 : index
    %c0_99 = arith.constant 0 : index
    %550 = vector.load %arg10[%c0_98, %c0_99] : memref<32x192xf32, #tpu.memory_space<vmem>>, vector<32x192xf32>
    %cst_100 = arith.constant dense<0.000000e+00> : vector<2x192xf32>
    %551 = tpu.matmul %549, %550, %cst_100 {dimension_numbers = #tpu.dot_dimension_numbers<[1], [0], [0], [1], [0, 0, 1, 1], [], []>} : vector<2x32xf32>, vector<32x192xf32>, vector<2x192xf32> -> vector<2x192xf32>
    %c0_101 = arith.constant 0 : index
    %c0_102 = arith.constant 0 : index
    %552 = vector.load %arg11[%c0_101, %c0_102] : memref<1x192xf32, #tpu.memory_space<vmem>>, vector<1x192xf32>
    %553 = vector.broadcast %552 : vector<1x192xf32> to vector<2x192xf32>
    %554 = arith.addf %551, %553 : vector<2x192xf32>
    %555 = vector.extract_strided_slice %554 {offsets = [0, 0], sizes = [2, 32], strides = [1, 1]} : vector<2x192xf32> to vector<2x32xf32>
    %556 = arith.negf %555 : vector<2x32xf32>
    %557 = math.exp %556 : vector<2x32xf32>
    %cst_103 = arith.constant 1.000000e+00 : f32
    %558 = vector.broadcast %cst_103 : f32 to vector<2x32xf32>
    %559 = arith.addf %558, %557 : vector<2x32xf32>
    %560 = arith.divf %558, %559 : vector<2x32xf32>
    %561 = vector.extract_strided_slice %554 {offsets = [0, 32], sizes = [2, 32], strides = [1, 1]} : vector<2x192xf32> to vector<2x32xf32>
    %562 = arith.negf %561 : vector<2x32xf32>
    %563 = math.exp %562 : vector<2x32xf32>
    %cst_104 = arith.constant 1.000000e+00 : f32
    %564 = vector.broadcast %cst_104 : f32 to vector<2x32xf32>
    %565 = arith.addf %564, %563 : vector<2x32xf32>
    %566 = arith.divf %564, %565 : vector<2x32xf32>
    %567 = vector.extract_strided_slice %554 {offsets = [0, 64], sizes = [2, 32], strides = [1, 1]} : vector<2x192xf32> to vector<2x32xf32>
    %c0_105 = arith.constant 0 : index
    %c0_106 = arith.constant 0 : index
    %568 = vector.load %arg12[%c0_105, %c0_106] : memref<1x32xf32, #tpu.memory_space<vmem>>, vector<1x32xf32>
    %569 = vector.broadcast %568 : vector<1x32xf32> to vector<2x32xf32>
    %570 = arith.mulf %560, %569 : vector<2x32xf32>
    %571 = arith.addf %567, %570 : vector<2x32xf32>
    %572 = math.tanh %571 : vector<2x32xf32>
    %573 = vector.extract_strided_slice %554 {offsets = [0, 96], sizes = [2, 32], strides = [1, 1]} : vector<2x192xf32> to vector<2x32xf32>
    %574 = arith.negf %573 : vector<2x32xf32>
    %575 = math.exp %574 : vector<2x32xf32>
    %cst_107 = arith.constant 1.000000e+00 : f32
    %576 = vector.broadcast %cst_107 : f32 to vector<2x32xf32>
    %577 = arith.addf %576, %575 : vector<2x32xf32>
    %578 = arith.divf %576, %577 : vector<2x32xf32>
    %579 = vector.extract_strided_slice %554 {offsets = [0, 128], sizes = [2, 32], strides = [1, 1]} : vector<2x192xf32> to vector<2x32xf32>
    %580 = arith.negf %579 : vector<2x32xf32>
    %581 = math.exp %580 : vector<2x32xf32>
    %cst_108 = arith.constant 1.000000e+00 : f32
    %582 = vector.broadcast %cst_108 : f32 to vector<2x32xf32>
    %583 = arith.addf %582, %581 : vector<2x32xf32>
    %584 = arith.divf %582, %583 : vector<2x32xf32>
    %585 = vector.extract_strided_slice %554 {offsets = [0, 160], sizes = [2, 32], strides = [1, 1]} : vector<2x192xf32> to vector<2x32xf32>
    %c0_109 = arith.constant 0 : index
    %c0_110 = arith.constant 0 : index
    %586 = vector.load %arg13[%c0_109, %c0_110] : memref<1x32xf32, #tpu.memory_space<vmem>>, vector<1x32xf32>
    %587 = vector.broadcast %586 : vector<1x32xf32> to vector<2x32xf32>
    %588 = arith.mulf %578, %587 : vector<2x32xf32>
    %589 = arith.addf %585, %588 : vector<2x32xf32>
    %590 = math.tanh %589 : vector<2x32xf32>
    %cst_111 = arith.constant 1.000000e+00 : f32
    %591 = vector.broadcast %cst_111 : f32 to vector<2x32xf32>
    %592 = arith.subf %591, %566 : vector<2x32xf32>
    %593 = arith.mulf %592, %572 : vector<2x32xf32>
    %cst_112 = arith.constant 1.000000e+00 : f32
    %594 = vector.broadcast %cst_112 : f32 to vector<2x32xf32>
    %595 = arith.subf %594, %584 : vector<2x32xf32>
    %596 = arith.mulf %595, %590 : vector<2x32xf32>
    %597 = arith.addf %593, %596 : vector<2x32xf32>
    %c0_113 = arith.constant 0 : index
    %c0_114 = arith.constant 0 : index
    %598 = vector.load %arg14[%c0_113, %c0_114] : memref<32x2xf32, #tpu.memory_space<vmem>>, vector<32x2xf32>
    %cst_115 = arith.constant dense<0.000000e+00> : vector<2x2xf32>
    %599 = tpu.matmul %597, %598, %cst_115 {dimension_numbers = #tpu.dot_dimension_numbers<[1], [0], [0], [1], [0, 0, 1, 1], [], []>} : vector<2x32xf32>, vector<32x2xf32>, vector<2x2xf32> -> vector<2x2xf32>
    %c0_116 = arith.constant 0 : index
    %c0_117 = arith.constant 0 : index
    %600 = vector.load %arg15[%c0_116, %c0_117] : memref<1x2xf32, #tpu.memory_space<vmem>>, vector<1x2xf32>
    %601 = vector.broadcast %600 : vector<1x2xf32> to vector<2x2xf32>
    %602 = arith.addf %599, %601 : vector<2x2xf32>
    %c0_118 = arith.constant 0 : index
    %c0_119 = arith.constant 0 : index
    %603 = vector.load %arg16[%c0_118, %c0_119] : memref<2x2xf32, #tpu.memory_space<vmem>>, vector<2x2xf32>
    tpu.vector_store %arg16[%c0_118, %c0_119], %602 {strides = array<i32>} : memref<2x2xf32, #tpu.memory_space<vmem>>, vector<2x2xf32>,
    return
  }
}

</mosaic_0001>

<bundles_post_ra>
// kernel: spoilernet_forward.1
= control target key start
LH: loop header
LB: loop body
LE: loop exit
PB: predicated region body
PF: predicated region fallthrough
CT: control target
= control target key end

     0   :  { %s3928_s0 = inlined_call_operand.vmem [shape: f32[16,32], index: 0, kind: input, shape index: {}]   ;;  %s3929_s1 = inlined_call_operand.vmem [shape: f32[32,192], index: 1, kind: input, shape index: {}]   ;;  %s3930_s2 = inlined_call_operand.vmem [shape: f32[1,192], index: 2, kind: input, shape index: {}]   ;;  %s3931_s3 = inlined_call_operand.vmem [shape: f32[32,96], index: 3, kind: input, shape index: {}]   ;;  %s3932_s4 = inlined_call_operand.vmem [shape: f32[32,96], index: 4, kind: input, shape index: {}]   ;;  %s3933_s5 = inlined_call_operand.vmem [shape: f32[1,32], index: 5, kind: input, shape index: {}]   ;;  %s3934_s6 = inlined_call_operand.vmem [shape: f32[1,32], index: 6, kind: input, shape index: {}]   ;;  %s3935_s7 = inlined_call_operand.vmem [shape: f32[32,32], index: 7, kind: input, shape index: {}]   ;;  %s3936_s8 = inlined_call_operand.vmem [shape: f32[1,32], index: 8, kind: input, shape index: {}]   ;;  %s3937_s9 = inlined_call_operand.vmem [shape: f32[32,32], index: 9, kind: input, shape index: {}]   ;;  %s3938_s10 = inlined_call_operand.vmem [shape: f32[32,192], index: 10, kind: input, shape index: {}]   ;;  %s3939_s11 = inlined_call_operand.vmem [shape: f32[1,192], index: 11, kind: input, shape index: {}]   ;;  %s3940_s12 = inlined_call_operand.vmem [shape: f32[1,32], index: 12, kind: input, shape index: {}]   ;;  %s3941_s13 = inlined_call_operand.vmem [shape: f32[1,32], index: 13, kind: input, shape index: {}]   ;;  %s3942_s14 = inlined_call_operand.vmem [shape: f32[32,2], index: 14, kind: input, shape index: {}]   ;;  %s3943_s15 = inlined_call_operand.vmem [shape: f32[1,2], index: 15, kind: input, shape index: {}]   ;;  %s3944_s16 = inlined_call_operand.hbm [shape: f32[2,2], index: 16, kind: output, shape index: {}]  }
   0x1   :  { %3946 = sst [smem:[#allocation6_spill]] %s3928_s0 }
   0x2   :  { %v57_v0 = vld [vmem:[%s3929_s1 + $0x8] sm:$0xff]  ;;  %v59_v1 = vld [vmem:[%s3929_s1 + $0x18] sm:$0xff]  ;;  %v160_v2 = vld [vmem:[%s3931_s3] sm:$0xff]  ;;  %v3269_v3 = vmov 0.0|0.0   ;;  %vm3270_vm0 = vmmov 0   ;;  %v3271_v8 = vmov 0.0  }
   0x3   :  { %2950 = vmatprep.subr.bf16.mxu1 %v3269_v3  ;;  %v2942_v4 = vpack.c.bf16 %v59_v1, %v57_v0  ;;  %v161_v5 = vld [vmem:[%s3931_s3 + $0x8] sm:$0xff]  ;;  %v56_v6 = vld [vmem:[%s3929_s1] sm:$0xff]  ;;  %v58_v7 = vld [vmem:[%s3929_s1 + $0x10] sm:$0xff]  ;;  %2741 = vmatprep.mubr.msk.f32.mxu1 %vm3270_vm0, %v3271_v8 }
   0x4   :  { %v3382_v9 = vpack.c.bf16 %v161_v5, %v160_v2  ;;  %v2944_v10 = vpack.c.bf16 %v58_v7, %v56_v6  ;;  %v61_v11 = vld [vmem:[%s3929_s1 + $0x28] sm:$0xff]  ;;  %v63_v12 = vld [vmem:[%s3929_s1 + $0x38] sm:$0xff]  ;;  %v162_v13 = vld [vmem:[%s3931_s3 + $0x10] sm:$0xff]  ;;  %147 = vmatprep.mubr.f32.mxu0 %v3271_v8 }
   0x5   :  { %2943 = vmatprep.subr.bf16.mxu0 %v2942_v4  ;;  %v2946_v14 = vpack.c.bf16 %v63_v12, %v61_v11  ;;  %v163_v15 = vld [vmem:[%s3931_s3 + $0x18] sm:$0xff]  ;;  %v60_v16 = vld [vmem:[%s3929_s1 + $0x20] sm:$0xff]  ;;  %v62_v17 = vld [vmem:[%s3929_s1 + $0x30] sm:$0xff] }
   0x6   :  { %2952 = vmatpush3.bf16.msra.mxu1 %v3382_v9  ;;  %2945 = vmatpush1.bf16.msra.mxu0 %v2944_v10  ;;  %v3404_v18 = vpack.c.bf16 %v163_v15, %v162_v13  ;;  %v2948_v19 = vpack.c.bf16 %v62_v17, %v60_v16  ;;  %v2584_v20 = vld [vmem:[%s3933_s5] ss:$0 sm:$0xff] }
   0x7   :  { %21 = vsyncpa [#allocation4], 0  ;;  %2953 = vmatprep.subr.bf16.mxu1 %v3269_v3  ;;  %2947 = vmatprep.subr.bf16.mxu0 %v2946_v14  ;;  %s3272_s3 = smov 64   ;;  %s3947_s18 = sld [smem:[#allocation6_spill]]  ;;  %vm76_vm1 = vcmask 261120   ;;  %v164_v22 = vld [vmem:[%s3932_s4] sm:$0xff]  ;;  %v66_v35 = vlaneseq }
   0x8   :  { %349 = vrot.lane.b32.xlu0 %v2584_v20, %s3272_s3  ;;  %v165_v23 = vld [vmem:[%s3932_s4 + $0x8] sm:$0xff]  ;;  %v166_v26 = vld [vmem:[%s3932_s4 + $0x10] sm:$0xff]  ;;  %v167_v27 = vld [vmem:[%s3932_s4 + $0x18] sm:$0xff]  ;;  %s3273_s30 = smov 96   ;;  %s3274_s0 = smov 32   ;;  %vm1994_vm2 = vcmask 254976  }
   0x9   :  { %v3432_v24 = vpack.c.bf16 %v165_v23, %v164_v22  ;;  %v3446_v28 = vpack.c.bf16 %v167_v27, %v166_v26  ;;  %v3465_v36 = vshrl.u32 %v66_v35, 7  ;;  %v64_v38 = vld [vmem:[%s3930_s2] sm:$0x3]  ;;  %vm2006_vm3 = vcmask 259076   ;;  %s3275_s17 = smov [#allocation3]  }
   0xa   :  { %2955 = vmatpush3.bf16.msra.mxu1 %v3404_v18  ;;  %2949 = vmatpush1.bf16.msra.mxu0 %v2948_v19  ;;  %v2585_v52 = vld [vmem:[%s3934_s6] ss:$0 sm:$0xff]  ;;  %vm2000_vm4 = vcmask 257026   ;;  %vm2012_vm5 = vcmask 261126   ;;  %vm2566_vm6 = vcmask 9216  }
   0xb   :  { %2956 = vmatprep.subr.bf16.mxu0 %v3269_v3  ;;  %2962 = vmatprep.subr.bf16.mxu1 %v3269_v3  ;;  %v68_v37 = vsub.s32 0, %v3465_v36  ;;  %v72_v13 = vsub.s32 1, %v3465_v36  ;;  %v2480_v36 = vld [vmem:[%s3942_s14] sm:$0xff] }
   0xd   :  { %v54_v21 = vld [vmem:[%s3947_s18] sm:$0xff]  ;;  %2742 = vmatmul.mubr.f32.vlgmr.msra.gmra.mrb[0].mxu1 %v3271_v8  ;;  %v55_v25 = vld [vmem:[%s3947_s18 + $0x8] sm:$0xff]  ;;  %v69_v39 = vrot.slane %v64_v38, %v68_v37  ;;  %v3499_v14 = vrot.slane %v64_v38, %v72_v13  ;;  %s2574_s18 = sshll.u32 %s3275_s17, 4  ;;  %s2575_s18 = int_to_ptr.vmem [resolvable:$true] %s2574_s18 }
   0xe   :  { %2582 = vmatmul.mubr.msk.f32.vlgmr.msra.gmra.mrb[0].mxu0 %vm76_vm1, %v54_v21  ;;  %2964 = vmatpush3.bf16.msra.mxu1 %v3382_v9  ;;  %p3250_p1 = scmp.lt.s32.totalorder %s2575_s18, %s2575_s18 }
   0xf   :  { %153 = vmatprep.mubr.f32.mxu0 %v3271_v8  ;;  %2965 = vmatprep.subr.bf16.mxu1 %v3269_v3 }
  0x10   :  { %2763 = vmatprep.mubr.msk.f32.mxu1 %vm3270_vm0, %v3271_v8  ;;  %2958 = vmatpush3.bf16.msra.mxu0 %v3432_v24 }
  0x11   :  { %2959 = vmatprep.subr.bf16.mxu0 %v3269_v3 }
  0x12   :  { %2967 = vmatpush3.bf16.msra.mxu1 %v3404_v18  ;;  %2583 = vmatmul.mubr.msk.f32.gmra.mrb[2].mxu0 %vm76_vm1, %v55_v25 }
  0x13   :  { %2974 = vmatprep.subr.bf16.mxu1 %v3269_v3  ;;  %2752 = vmatprep.mubr.msk.f32.mxu0 %vm3270_vm0, %v3271_v8 }
  0x14   :  { %2961 = vmatpush3.bf16.msra.mxu0 %v3446_v28 }
  0x15   :  { %2968 = vmatprep.subr.bf16.mxu0 %v3269_v3 }
  0x17   :  { %2753 = vmatmul.mubr.f32.vlgmr.msra.gmra.mrb[4].mxu0 %v3271_v8 }
  0x18   :  { %2970 = vmatpush3.bf16.msra.mxu0 %v3432_v24  ;;  %2774 = vmatprep.mubr.msk.f32.mxu0 %vm3270_vm0, %v3271_v8 }
  0x19   :  { %2971 = vmatprep.subr.bf16.mxu0 %v3269_v3 }
  0x1c   :  { %2973 = vmatpush3.bf16.msra.mxu0 %v3446_v28 }
  0x1d   :  { %2980 = vmatprep.subr.bf16.mxu0 %v3269_v3 }
  0x7a   :  { %v3459_v29 = vpop.permute.xlu0 %349 }
  0xe0   :  { %v249_v30 = vpop.f32.mrb[0].mxu1 }
  0xe1   :  { %v149_v31 = vpop.f32.mrb[0].mxu0  ;;  %v352_v32 = vadd.f32 %v3459_v29, %v249_v30  ;;  %v2743_v33 = vpop.f32.mrb[1].mxu1 }
  0xe2   :  { %v3462_v34 = vpop.f32.mrb[1].mxu0  ;;  %v3473_v40 = vadd.f32 %v149_v31, %v69_v39 }
  0xe3   :  { %354 = vrot.lane.b32.xlu0 %v352_v32, %s3272_s3 }
  0xe4   :  { %v323_v41 = vadd.f32 %v249_v30, %v3473_v40 }
  0xe5   :  { %v155_v43 = vpop.f32.mrb[2].mxu0 }
  0xe6   :  { %v2586_v42 = vmul.f32 -1.442695, %v323_v41  ;;  %v157_v44 = vpop.f32.mrb[3].mxu0  ;;  %v3488_v60 = vadd.f32 %v155_v43, %v69_v39 }
  0xe7   :  { %v3502_v16 = vadd.f32 %v157_v44, %v3499_v14 }
  0xe8   :  { %3083 = vpow2.f32 %v2586_v42 }
  0xea   :  { %v319_v45 = vpop.f32.mrb[4].mxu0 }
  0xeb   :  { %v2754_v46 = vpop.f32.mrb[5].mxu0  ;;  %v331_v53 = vrot.slane %v319_v45, 2 }
  0xf2   :  { %v3084_v47 = vpop.eup %3083 }
  0xf3   :  { %v327_v48 = vadd.f32 1.0, %v3084_v47 }
  0xf5   :  { %3085 = vrcp.f32 %v327_v48 }
  0xff   :  { %v3086_v49 = vpop.eup %3085 }
 0x100   :  { %v380_v2 = vsub.f32 1.0, %v3086_v49  ;;  %v386_v5 = vmul.f32 0.0, %v3086_v49 }
 0x155   :  { %v355_v50 = vpop.permute.xlu0 %354 }
 0x156   :  { %v357_v51 = vmul.f32 %v3086_v49, %v355_v50 }
 0x158   :  { %359 = vrot.lane.b32.xlu1 %v357_v51, %s3272_s3 }
 0x15c   :  { %364 = vrot.lane.b32.xlu1 %v2585_v52, %s3272_s3 }
 0x160   :  { %332 = vrot.lane.b32.xlu1 %v331_v53, %s3273_s30 }
 0x1ca   :  { %v360_v54 = vpop.permute.xlu1 %359 }
 0x1cb   :  { %v362_v55 = vadd.f32 %v360_v54, %v3473_v40 }
 0x1cd   :  { %3087 = vtanh.f32 %v362_v55 }
 0x1ce   :  { %v3483_v56 = vpop.permute.xlu1 %364 }
 0x1cf   :  { %v367_v57 = vadd.f32 %v3483_v56, %v319_v45 }
 0x1d1   :  { %v369_v59 = vrot.slane %v367_v57, 2 }
 0x1d2   :  { %v333_v61 = vpop.permute.xlu1 %332 }
 0x1d3   :  { %v335_v62 = vadd.f32 %v333_v61, %v3488_v60  ;;  %v342_v21 = vadd.f32 %v333_v61, %v3502_v16 }
 0x1d5   :  { %v2587_v63 = vmul.f32 -1.442695, %v335_v62  ;;  %v2588_v22 = vmul.f32 -1.442695, %v342_v21 }
 0x1d7   :  { %v3088_v58 = vpop.eup %3087  ;;  %3089 = vpow2.f32 %v2587_v63 }
 0x1d8   :  { %382 = vrot.lane.b32.xlu0 %v3088_v58, %s3273_s30 }
 0x1dc   :  { %370 = vrot.lane.b32.xlu0 %v369_v59, %s3274_s0 }
 0x1e1   :  { %v3090_v0 = vpop.eup %3089 }
 0x1e2   :  { %v339_v1 = vadd.f32 1.0, %v3090_v0 }
 0x1e4   :  { %3091 = vrcp.f32 %v339_v1 }
 0x1ee   :  { %v3092_v7 = vpop.eup %3091 }
 0x24a   :  { %v383_v4 = vpop.permute.xlu0 %382 }
 0x24b   :  { %v385_v6 = vmul.f32 %v383_v4, %v380_v2 }
 0x24d   :  { %v3491_v10 = vadd.f32 %v386_v5, %v385_v6 }
 0x24e   :  { %v371_v11 = vpop.permute.xlu0 %370 }
 0x24f   :  { %v373_v12 = vmul.f32 %v3092_v7, %v371_v11  ;;  %397 = vrot.lane.b32.xlu1 %v3491_v10, %s3273_s30  ;;  %v606_v7 = vrot.slane %v3491_v10, 6 }
 0x251   :  { %375 = vrot.lane.b32.xlu0 %v373_v12, %s3272_s3 }
 0x2c1   :  { %v398_v15 = vpop.permute.xlu1 %397 }
 0x2c2   :  { %2764 = vmatmul.mubr.msk.f32.vlgmr.msra.gmra.mrb[2].mxu1 %vm76_vm1, %v398_v15 }
 0x2c3   :  { %v376_v17 = vpop.permute.xlu0 %375  ;;  %2976 = vmatpush3.bf16.msra.mxu1 %v3382_v9  ;;  %2785 = vmatprep.mubr.msk.f32.mxu1 %vm3270_vm0, %v3271_v8 }
 0x2c4   :  { %v378_v19 = vadd.f32 %v376_v17, %v3502_v16  ;;  %2977 = vmatprep.subr.bf16.mxu1 %v3269_v3 }
 0x2c6   :  { %3093 = vtanh.f32 %v378_v19 }
 0x2c7   :  { %2979 = vmatpush3.bf16.msra.mxu1 %v3404_v18  ;;  %3095 = vpow2.f32 %v2588_v22 }
 0x2c8   :  { %2986 = vmatprep.subr.bf16.mxu1 %v3269_v3 }
 0x2d0   :  { %v3094_v20 = vpop.eup %3093 }
 0x2d1   :  { %390 = vrot.lane.b32.xlu1 %v3094_v20, %s3273_s30  ;;  %v3096_v23 = vpop.eup %3095 }
 0x2d2   :  { %v346_v25 = vadd.f32 1.0, %v3096_v23 }
 0x2d4   :  { %3097 = vrcp.f32 %v346_v25 }
 0x2de   :  { %v3098_v26 = vpop.eup %3097 }
 0x2df   :  { %v388_v27 = vsub.f32 1.0, %v3098_v26  ;;  %v394_v31 = vmul.f32 0.0, %v3098_v26 }
 0x343   :  { %v391_v30 = vpop.permute.xlu1 %390 }
 0x344   :  { %v393_v32 = vmul.f32 %v391_v30, %v388_v27 }
 0x346   :  { %v3514_v33 = vadd.f32 %v394_v31, %v393_v32 }
 0x348   :  { %v472_v35 = vrot.slane %v3514_v33, 6 }
 0x34a   :  { %2775 = vmatmul.mubr.msk.f32.vlgmr.msra.gmra.mrb[6].mxu0 %vm76_vm1, %v472_v35  ;;  %v616_v35 = vrot.slane %v3514_v33, 2 }
 0x34b   :  { %2982 = vmatpush3.bf16.msra.mxu0 %v3432_v24  ;;  %2796 = vmatprep.mubr.msk.f32.mxu0 %vm3270_vm0, %v3271_v8 }
 0x34c   :  { %2983 = vmatprep.subr.bf16.mxu0 %v3269_v3 }
 0x34f   :  { %2985 = vmatpush3.bf16.msra.mxu0 %v3446_v28 }
 0x350   :  { %2992 = vmatprep.subr.bf16.mxu0 %v3269_v3 }
 0x395   :  { %v467_v38 = vpop.f32.mrb[2].mxu1 }
 0x396   :  { %v574_v39 = vadd.f32 %v467_v38, %v3459_v29  ;;  %v2765_v41 = vpop.f32.mrb[3].mxu1  ;;  %v546_v43 = vrot.slane %v467_v38, 6 }
 0x398   :  { %v576_v42 = vrot.slane %v574_v39, 6  ;;  %v548_v44 = vadd.f32 %v546_v43, %v3473_v40 }
 0x39a   :  { %577 = vrot.lane.b32.xlu0 %v576_v42, %s3272_s3  ;;  %v2591_v45 = vmul.f32 -1.442695, %v548_v44 }
 0x39c   :  { %3099 = vpow2.f32 %v2591_v45 }
 0x3a6   :  { %v3100_v46 = vpop.eup %3099 }
 0x3a7   :  { %v552_v47 = vadd.f32 1.0, %v3100_v46 }
 0x3a9   :  { %3101 = vrcp.f32 %v552_v47 }
 0x3b3   :  { %v3102_v48 = vpop.eup %3101 }
 0x3b4   :  { %v600_v6 = vsub.f32 1.0, %v3102_v48  ;;  %v608_v12 = vmul.f32 %v3102_v48, %v606_v7 }
 0x40c   :  { %v578_v49 = vpop.permute.xlu0 %577 }
 0x40d   :  { %v580_v50 = vmul.f32 %v3102_v48, %v578_v49 }
 0x40f   :  { %582 = vrot.lane.b32.xlu1 %v580_v50, %s3272_s3 }
 0x41d   :  { %v541_v51 = vpop.f32.mrb[6].mxu0 }
 0x41e   :  { %v556_v52 = vrot.slane %v541_v51, 4  ;;  %v587_v53 = vadd.f32 %v541_v51, %v3483_v56  ;;  %v2776_v54 = vpop.f32.mrb[7].mxu0 }
 0x420   :  { %557 = vrot.lane.b32.xlu0 %v556_v52, %s3273_s30  ;;  %v589_v55 = vrot.slane %v587_v53, 4 }
 0x424   :  { %590 = vrot.lane.b32.xlu0 %v589_v55, %s3274_s0 }
 0x481   :  { %v583_v57 = vpop.permute.xlu1 %582 }
 0x482   :  { %v585_v58 = vadd.f32 %v583_v57, %v3473_v40 }
 0x484   :  { %3103 = vtanh.f32 %v585_v58 }
 0x48e   :  { %v3104_v59 = vpop.eup %3103 }
 0x48f   :  { %602 = vrot.lane.b32.xlu1 %v3104_v59, %s3273_s30 }
 0x492   :  { %v558_v61 = vpop.permute.xlu0 %557 }
 0x493   :  { %v560_v62 = vadd.f32 %v558_v61, %v3488_v60  ;;  %v567_v25 = vadd.f32 %v558_v61, %v3502_v16 }
 0x495   :  { %v2592_v63 = vmul.f32 -1.442695, %v560_v62  ;;  %v2593_v26 = vmul.f32 -1.442695, %v567_v25 }
 0x496   :  { %v591_v4 = vpop.permute.xlu0 %590 }
 0x497   :  { %3105 = vpow2.f32 %v2592_v63 }
 0x4a1   :  { %v3106_v0 = vpop.eup %3105 }
 0x4a2   :  { %v564_v1 = vadd.f32 1.0, %v3106_v0 }
 0x4a4   :  { %3107 = vrcp.f32 %v564_v1 }
 0x4ae   :  { %v3108_v2 = vpop.eup %3107 }
 0x4af   :  { %v593_v5 = vmul.f32 %v3108_v2, %v591_v4 }
 0x4b1   :  { %595 = vrot.lane.b32.xlu1 %v593_v5, %s3272_s3 }
 0x501   :  { %v603_v11 = vpop.permute.xlu1 %602 }
 0x502   :  { %v605_v15 = vmul.f32 %v603_v11, %v600_v6 }
 0x504   :  { %v3536_v17 = vadd.f32 %v608_v12, %v605_v15 }
 0x506   :  { %v621_v19 = vrot.slane %v3536_v17, 2 }
 0x508   :  { %622 = vrot.lane.b32.xlu0 %v621_v19, %s3273_s30 }
 0x523   :  { %v596_v20 = vpop.permute.xlu1 %595 }
 0x524   :  { %v598_v21 = vadd.f32 %v596_v20, %v3502_v16 }
 0x526   :  { %3109 = vtanh.f32 %v598_v21 }
 0x527   :  { %3111 = vpow2.f32 %v2593_v26 }
 0x530   :  { %v3110_v22 = vpop.eup %3109 }
 0x531   :  { %612 = vrot.lane.b32.xlu1 %v3110_v22, %s3273_s30  ;;  %v3112_v27 = vpop.eup %3111  ;;  %v831_v22 = vrot.slane %v3536_v17, 6 }
 0x532   :  { %v571_v30 = vadd.f32 1.0, %v3112_v27 }
 0x534   :  { %3113 = vrcp.f32 %v571_v30 }
 0x53e   :  { %v3114_v31 = vpop.eup %3113 }
 0x53f   :  { %v610_v32 = vsub.f32 1.0, %v3114_v31  ;;  %v618_v39 = vmul.f32 %v3114_v31, %v616_v35 }
 0x57a   :  { %v623_v23 = vpop.permute.xlu0 %622 }
 0x57b   :  { %2786 = vmatmul.mubr.msk.f32.vlgmr.msra.gmra.mrb[4].mxu1 %vm76_vm1, %v623_v23 }
 0x57c   :  { %2988 = vmatpush3.bf16.msra.mxu1 %v3382_v9  ;;  %2807 = vmatprep.mubr.msk.f32.mxu1 %vm3270_vm0, %v3271_v8 }
 0x57d   :  { %2989 = vmatprep.subr.bf16.mxu1 %v3269_v3 }
 0x580   :  { %2991 = vmatpush3.bf16.msra.mxu1 %v3404_v18 }
 0x581   :  { %2998 = vmatprep.subr.bf16.mxu1 %v3269_v3 }
 0x5a3   :  { %v613_v38 = vpop.permute.xlu1 %612 }
 0x5a4   :  { %v615_v41 = vmul.f32 %v613_v38, %v610_v32 }
 0x5a6   :  { %v3551_v42 = vadd.f32 %v618_v39, %v615_v41 }
 0x5a8   :  { %v697_v43 = vrot.slane %v3551_v42, 4 }
 0x5aa   :  { %2797 = vmatmul.mubr.msk.f32.vlgmr.msra.gmra.mrb[8].mxu0 %vm76_vm1, %v697_v43 }
 0x5ab   :  { %2994 = vmatpush3.bf16.msra.mxu0 %v3432_v24  ;;  %2818 = vmatprep.mubr.msk.f32.mxu0 %vm3270_vm0, %v3271_v8 }
 0x5ac   :  { %2995 = vmatprep.subr.bf16.mxu0 %v3269_v3 }
 0x5af   :  { %2997 = vmatpush3.bf16.msra.mxu0 %v3446_v28 }
 0x5b0   :  { %3004 = vmatprep.subr.bf16.mxu0 %v3269_v3 }
 0x64e   :  { %v692_v44 = vpop.f32.mrb[4].mxu1 }
 0x64f   :  { %v799_v45 = vadd.f32 %v692_v44, %v3459_v29  ;;  %v2787_v46 = vpop.f32.mrb[5].mxu1  ;;  %v771_v51 = vrot.slane %v692_v44, 4  ;;  %v841_v44 = vrot.slane %v3551_v42, 2 }
 0x651   :  { %v801_v47 = vrot.slane %v799_v45, 4  ;;  %v773_v52 = vadd.f32 %v771_v51, %v3473_v40 }
 0x653   :  { %802 = vrot.lane.b32.xlu0 %v801_v47, %s3272_s3  ;;  %v2596_v53 = vmul.f32 -1.442695, %v773_v52 }
 0x655   :  { %3115 = vpow2.f32 %v2596_v53 }
 0x65f   :  { %v3116_v54 = vpop.eup %3115 }
 0x660   :  { %v777_v55 = vadd.f32 1.0, %v3116_v54 }
 0x662   :  { %3117 = vrcp.f32 %v777_v55 }
 0x66c   :  { %v3118_v57 = vpop.eup %3117 }
 0x66d   :  { %v825_v21 = vsub.f32 1.0, %v3118_v57  ;;  %v833_v25 = vmul.f32 %v3118_v57, %v831_v22 }
 0x67d   :  { %v766_v48 = vpop.f32.mrb[8].mxu0 }
 0x67e   :  { %v781_v49 = vrot.slane %v766_v48, 6  ;;  %v2798_v50 = vpop.f32.mrb[9].mxu0  ;;  %v812_v59 = vadd.f32 %v766_v48, %v3483_v56 }
 0x680   :  { %782 = vrot.lane.b32.xlu0 %v781_v49, %s3273_s30  ;;  %v814_v62 = vrot.slane %v812_v59, 6 }
 0x6c5   :  { %v803_v58 = vpop.permute.xlu0 %802 }
 0x6c6   :  { %v805_v61 = vmul.f32 %v3118_v57, %v803_v58 }
 0x6c8   :  { %807 = vrot.lane.b32.xlu1 %v805_v61, %s3272_s3 }
 0x6cc   :  { %815 = vrot.lane.b32.xlu1 %v814_v62, %s3274_s0 }
 0x6f2   :  { %v783_v63 = vpop.permute.xlu0 %782 }
 0x6f3   :  { %v785_v0 = vadd.f32 %v783_v63, %v3488_v60  ;;  %v792_v32 = vadd.f32 %v783_v63, %v3502_v16 }
 0x6f5   :  { %v2597_v1 = vmul.f32 -1.442695, %v785_v0  ;;  %v2598_v35 = vmul.f32 -1.442695, %v792_v32 }
 0x6f7   :  { %3119 = vpow2.f32 %v2597_v1 }
 0x701   :  { %v3120_v2 = vpop.eup %3119 }
 0x702   :  { %v789_v4 = vadd.f32 1.0, %v3120_v2 }
 0x704   :  { %3121 = vrcp.f32 %v789_v4 }
 0x70e   :  { %v3122_v7 = vpop.eup %3121 }
 0x73a   :  { %v808_v5 = vpop.permute.xlu1 %807 }
 0x73b   :  { %v810_v6 = vadd.f32 %v808_v5, %v3473_v40 }
 0x73d   :  { %3123 = vtanh.f32 %v810_v6 }
 0x73e   :  { %v816_v11 = vpop.permute.xlu1 %815 }
 0x73f   :  { %v818_v12 = vmul.f32 %v3122_v7, %v816_v11 }
 0x741   :  { %820 = vrot.lane.b32.xlu1 %v818_v12, %s3272_s3 }
 0x747   :  { %v3124_v15 = vpop.eup %3123 }
 0x748   :  { %827 = vrot.lane.b32.xlu0 %v3124_v15, %s3273_s30 }
 0x7b3   :  { %v821_v19 = vpop.permute.xlu1 %820 }
 0x7b4   :  { %v823_v20 = vadd.f32 %v821_v19, %v3502_v16 }
 0x7b6   :  { %3125 = vtanh.f32 %v823_v20 }
 0x7b7   :  { %3127 = vpow2.f32 %v2598_v35 }
 0x7ba   :  { %v828_v23 = vpop.permute.xlu0 %827 }
 0x7bb   :  { %v830_v26 = vmul.f32 %v828_v23, %v825_v21 }
 0x7bd   :  { %v3574_v27 = vadd.f32 %v833_v25, %v830_v26 }
 0x7bf   :  { %v846_v30 = vrot.slane %v3574_v27, 4 }
 0x7c0   :  { %v3126_v31 = vpop.eup %3125 }
 0x7c1   :  { %847 = vrot.lane.b32.xlu0 %v846_v30, %s3273_s30  ;;  %837 = vrot.lane.b32.xlu1 %v3126_v31, %s3273_s30  ;;  %v3128_v38 = vpop.eup %3127 }
 0x7c2   :  { %v796_v39 = vadd.f32 1.0, %v3128_v38  ;;  %v1054_v38 = vrot.slane %v3574_v27, 6 }
 0x7c4   :  { %3129 = vrcp.f32 %v796_v39 }
 0x7ce   :  { %v3130_v41 = vpop.eup %3129 }
 0x7cf   :  { %v835_v43 = vsub.f32 1.0, %v3130_v41  ;;  %v843_v47 = vmul.f32 %v3130_v41, %v841_v44 }
 0x833   :  { %v848_v45 = vpop.permute.xlu0 %847  ;;  %v838_v46 = vpop.permute.xlu1 %837 }
 0x834   :  { %v840_v48 = vmul.f32 %v838_v46, %v835_v43  ;;  %2808 = vmatmul.mubr.msk.f32.vlgmr.msra.gmra.mrb[6].mxu1 %vm76_vm1, %v848_v45 }
 0x835   :  { %3000 = vmatpush3.bf16.msra.mxu1 %v3382_v9  ;;  %2829 = vmatprep.mubr.msk.f32.mxu1 %vm3270_vm0, %v3271_v8 }
 0x836   :  { %v3585_v49 = vadd.f32 %v843_v47, %v840_v48  ;;  %3001 = vmatprep.subr.bf16.mxu1 %v3269_v3 }
 0x838   :  { %v922_v50 = vrot.slane %v3585_v49, 2 }
 0x839   :  { %3003 = vmatpush3.bf16.msra.mxu1 %v3404_v18 }
 0x83a   :  { %2819 = vmatmul.mubr.msk.f32.vlgmr.msra.gmra.mrb[10].mxu0 %vm76_vm1, %v922_v50  ;;  %3010 = vmatprep.subr.bf16.mxu1 %v3269_v3 }
 0x83b   :  { %3006 = vmatpush3.bf16.msra.mxu0 %v3432_v24  ;;  %2840 = vmatprep.mubr.msk.f32.mxu0 %vm3270_vm0, %v3271_v8 }
 0x83c   :  { %3007 = vmatprep.subr.bf16.mxu0 %v3269_v3 }
 0x83f   :  { %3009 = vmatpush3.bf16.msra.mxu0 %v3446_v28 }
 0x840   :  { %3016 = vmatprep.subr.bf16.mxu0 %v3269_v3 }
 0x907   :  { %v917_v51 = vpop.f32.mrb[6].mxu1 }
 0x908   :  { %v1023_v52 = vadd.f32 %v917_v51, %v3459_v29  ;;  %v2809_v53 = vpop.f32.mrb[7].mxu1  ;;  %v996_v59 = vrot.slane %v917_v51, 2 }
 0x90a   :  { %v1025_v54 = vrot.slane %v1023_v52, 2  ;;  %v998_v61 = vadd.f32 %v996_v59, %v3473_v40 }
 0x90c   :  { %1026 = vrot.lane.b32.xlu0 %v1025_v54, %s3272_s3  ;;  %v2601_v62 = vmul.f32 -1.442695, %v998_v61 }
 0x90d   :  { %v991_v55 = vpop.f32.mrb[10].mxu0 }
 0x90e   :  { %1006 = vrot.lane.b32.xlu1 %v991_v55, %s3273_s30  ;;  %v2820_v57 = vpop.f32.mrb[11].mxu0  ;;  %v1036_v58 = vadd.f32 %v991_v55, %v3483_v56  ;;  %3131 = vpow2.f32 %v2601_v62 }
 0x912   :  { %1038 = vrot.lane.b32.xlu1 %v1036_v58, %s3274_s0 }
 0x918   :  { %v3132_v63 = vpop.eup %3131 }
 0x919   :  { %v1002_v0 = vadd.f32 1.0, %v3132_v63 }
 0x91b   :  { %3133 = vrcp.f32 %v1002_v0 }
 0x925   :  { %v3134_v1 = vpop.eup %3133 }
 0x926   :  { %v1048_v35 = vsub.f32 1.0, %v3134_v1  ;;  %v1056_v41 = vmul.f32 %v3134_v1, %v1054_v38 }
 0x97e   :  { %v1027_v2 = vpop.permute.xlu0 %1026 }
 0x97f   :  { %v1029_v4 = vmul.f32 %v3134_v1, %v1027_v2 }
 0x980   :  { %v1007_v5 = vpop.permute.xlu1 %1006 }
 0x981   :  { %v1009_v6 = vadd.f32 %v1007_v5, %v3488_v60  ;;  %1031 = vrot.lane.b32.xlu0 %v1029_v4, %s3272_s3  ;;  %v1016_v31 = vadd.f32 %v1007_v5, %v3502_v16 }
 0x983   :  { %v2602_v7 = vmul.f32 -1.442695, %v1009_v6  ;;  %v2603_v32 = vmul.f32 -1.442695, %v1016_v31  ;;  %v3652_v31 = vadd.f32 %v3462_v34, %v3499_v14 }
 0x984   :  { %v1039_v19 = vpop.permute.xlu1 %1038 }
 0x985   :  { %3135 = vpow2.f32 %v2602_v7 }
 0x98f   :  { %v3136_v11 = vpop.eup %3135 }
 0x990   :  { %v1013_v12 = vadd.f32 1.0, %v3136_v11 }
 0x992   :  { %3137 = vrcp.f32 %v1013_v12 }
 0x99c   :  { %v3138_v15 = vpop.eup %3137 }
 0x99d   :  { %v1041_v20 = vmul.f32 %v3138_v15, %v1039_v19 }
 0x99f   :  { %1043 = vrot.lane.b32.xlu0 %v1041_v20, %s3272_s3 }
 0x9f3   :  { %v1032_v21 = vpop.permute.xlu0 %1031 }
 0x9f4   :  { %v1034_v22 = vadd.f32 %v1032_v21, %v3473_v40 }
 0x9f6   :  { %3139 = vtanh.f32 %v1034_v22 }
 0xa00   :  { %v3140_v23 = vpop.eup %3139 }
 0xa01   :  { %1050 = vrot.lane.b32.xlu1 %v3140_v23, %s3273_s30 }
 0xa11   :  { %v1044_v25 = vpop.permute.xlu0 %1043 }
 0xa12   :  { %v1046_v26 = vadd.f32 %v1044_v25, %v3502_v16 }
 0xa14   :  { %3141 = vtanh.f32 %v1046_v26 }
 0xa15   :  { %3143 = vpow2.f32 %v2603_v32 }
 0xa1e   :  { %v3142_v30 = vpop.eup %3141 }
 0xa1f   :  { %1060 = vrot.lane.b32.xlu1 %v3142_v30, %s3273_s30  ;;  %v3144_v46 = vpop.eup %3143 }
 0xa20   :  { %v1020_v47 = vadd.f32 1.0, %v3144_v46 }
 0xa22   :  { %3145 = vrcp.f32 %v1020_v47 }
 0xa2c   :  { %v3146_v16 = vpop.eup %3145 }
 0xa2d   :  { %v1058_v48 = vsub.f32 1.0, %v3146_v16  ;;  %v1065_v52 = vmul.f32 %v3146_v16, %v922_v50 }
 0xa73   :  { %v1051_v39 = vpop.permute.xlu1 %1050 }
 0xa74   :  { %v1053_v43 = vmul.f32 %v1051_v39, %v1048_v35 }
 0xa76   :  { %v3615_v44 = vadd.f32 %v1056_v41, %v1053_v43 }
 0xa78   :  { %v1068_v45 = vrot.slane %v3615_v44, 6 }
 0xa7a   :  { %1069 = vrot.lane.b32.xlu0 %v1068_v45, %s3273_s30 }
 0xa91   :  { %v1061_v51 = vpop.permute.xlu1 %1060 }
 0xa92   :  { %v1063_v53 = vmul.f32 %v1061_v51, %v1058_v48 }
 0xa94   :  { %v3623_v54 = vadd.f32 %v1065_v52, %v1063_v53 }
 0xa96   :  { %2841 = vmatmul.mubr.msk.f32.vlgmr.msra.gmra.mrb[12].mxu0 %vm76_vm1, %v3623_v54 }
 0xa97   :  { %3018 = vmatpush3.bf16.msra.mxu0 %v3432_v24  ;;  %2862 = vmatprep.mubr.msk.f32.mxu0 %vm3270_vm0, %v3271_v8 }
 0xa98   :  { %3019 = vmatprep.subr.bf16.mxu0 %v3269_v3 }
 0xa9b   :  { %3021 = vmatpush3.bf16.msra.mxu0 %v3446_v28 }
 0xa9c   :  { %3028 = vmatprep.subr.bf16.mxu0 %v3269_v3 }
 0xaec   :  { %v1070_v55 = vpop.permute.xlu0 %1069 }
 0xaed   :  { %2830 = vmatmul.mubr.msk.f32.vlgmr.msra.gmra.mrb[8].mxu1 %vm76_vm1, %v1070_v55  ;;  %v1282_v55 = vrot.slane %v3623_v54, 2 }
 0xaee   :  { %3012 = vmatpush3.bf16.msra.mxu1 %v3382_v9  ;;  %2851 = vmatprep.mubr.msk.f32.mxu1 %vm3270_vm0, %v3271_v8 }
 0xaef   :  { %3013 = vmatprep.subr.bf16.mxu1 %v3269_v3 }
 0xaf2   :  { %3015 = vmatpush3.bf16.msra.mxu1 %v3404_v18 }
 0xaf3   :  { %3022 = vmatprep.subr.bf16.mxu1 %v3269_v3 }
 0xb69   :  { %v1212_v50 = vpop.f32.mrb[12].mxu0 }
 0xb6a   :  { %v1224_v57 = vrot.slane %v1212_v50, 2  ;;  %v2842_v58 = vpop.f32.mrb[13].mxu0  ;;  %v1254_v61 = vadd.f32 %v1212_v50, %v3483_v56 }
 0xb6c   :  { %1225 = vrot.lane.b32.xlu1 %v1224_v57, %s3273_s30  ;;  %v1256_v0 = vrot.slane %v1254_v61, 2 }
 0xbc0   :  { %v1139_v59 = vpop.f32.mrb[8].mxu1 }
 0xbc1   :  { %v1242_v62 = vadd.f32 %v1139_v59, %v3459_v29  ;;  %v2831_v63 = vpop.f32.mrb[9].mxu1  ;;  %v1216_v1 = vadd.f32 %v1139_v59, %v3488_v60 }
 0xbc3   :  { %1244 = vrot.lane.b32.xlu0 %v1242_v62, %s3272_s3  ;;  %v2606_v4 = vmul.f32 -1.442695, %v1216_v1 }
 0xbc5   :  { %3147 = vpow2.f32 %v2606_v4 }
 0xbc7   :  { %1257 = vrot.lane.b32.xlu0 %v1256_v0, %s3274_s0 }
 0xbcf   :  { %v3148_v7 = vpop.eup %3147 }
 0xbd0   :  { %v1220_v11 = vadd.f32 1.0, %v3148_v7 }
 0xbde   :  { %v1226_v2 = vpop.permute.xlu1 %1225 }
 0xbdf   :  { %v1228_v5 = vadd.f32 %v1226_v2, %v3473_v40  ;;  %v1235_v41 = vadd.f32 %v1226_v2, %v3652_v31 }
 0xbe1   :  { %v2607_v6 = vmul.f32 -1.442695, %v1228_v5  ;;  %v2608_v43 = vmul.f32 -1.442695, %v1235_v41 }
 0xbe3   :  { %3149 = vpow2.f32 %v2607_v6 }
 0xbe4   :  { %3151 = vrcp.f32 %v1220_v11 }
 0xbed   :  { %v3150_v12 = vpop.eup %3149 }
 0xbee   :  { %v1232_v15 = vadd.f32 1.0, %v3150_v12  ;;  %v3152_v19 = vpop.eup %3151 }
 0xbef   :  { %v1267_v34 = vsub.f32 1.0, %v3152_v19  ;;  %v1274_v48 = vmul.f32 %v3152_v19, %v1068_v45 }
 0xbf0   :  { %3153 = vrcp.f32 %v1232_v15 }
 0xbfa   :  { %v3154_v22 = vpop.eup %3153 }
 0xc35   :  { %v1245_v20 = vpop.permute.xlu0 %1244 }
 0xc36   :  { %v1247_v21 = vmul.f32 %v3152_v19, %v1245_v20 }
 0xc38   :  { %1249 = vrot.lane.b32.xlu1 %v1247_v21, %s3272_s3 }
 0xc39   :  { %v1258_v23 = vpop.permute.xlu0 %1257 }
 0xc3a   :  { %v1260_v25 = vmul.f32 %v3154_v22, %v1258_v23 }
 0xc3c   :  { %1262 = vrot.lane.b32.xlu0 %v1260_v25, %s3272_s3 }
 0xcaa   :  { %v1250_v26 = vpop.permute.xlu1 %1249 }
 0xcab   :  { %v1252_v30 = vadd.f32 %v1250_v26, %v3488_v60 }
 0xcad   :  { %3155 = vtanh.f32 %v1252_v30 }
 0xcae   :  { %v1263_v32 = vpop.permute.xlu0 %1262 }
 0xcaf   :  { %v1265_v35 = vadd.f32 %v1263_v32, %v3652_v31 }
 0xcb1   :  { %3157 = vtanh.f32 %v1265_v35 }
 0xcb2   :  { %3159 = vpow2.f32 %v2608_v43 }
 0xcb7   :  { %v3156_v38 = vpop.eup %3155 }
 0xcb8   :  { %1269 = vrot.lane.b32.xlu1 %v3156_v38, %s3273_s30 }
 0xcbb   :  { %v3158_v39 = vpop.eup %3157 }
 0xcbc   :  { %1278 = vrot.lane.b32.xlu0 %v3158_v39, %s3273_s30  ;;  %v3160_v46 = vpop.eup %3159 }
 0xcbd   :  { %v1239_v47 = vadd.f32 1.0, %v3160_v46 }
 0xcbf   :  { %3161 = vrcp.f32 %v1239_v47 }
 0xcc9   :  { %v3162_v14 = vpop.eup %3161 }
 0xcca   :  { %v1276_v53 = vsub.f32 1.0, %v3162_v14  ;;  %v1284_v57 = vmul.f32 %v3162_v14, %v1282_v55 }
 0xd2a   :  { %v1270_v16 = vpop.permute.xlu1 %1269 }
 0xd2b   :  { %v1272_v51 = vmul.f32 %v1270_v16, %v1267_v34 }
 0xd2d   :  { %v3660_v52 = vadd.f32 %v1274_v48, %v1272_v51 }
 0xd2e   :  { %v1279_v50 = vpop.permute.xlu0 %1278 }
 0xd2f   :  { %v1281_v58 = vmul.f32 %v1279_v50, %v1276_v53  ;;  %1287 = vrot.lane.b32.xlu1 %v3660_v52, %s3273_s30 }
 0xd31   :  { %v3665_v59 = vadd.f32 %v1284_v57, %v1281_v58 }
 0xd33   :  { %v1362_v61 = vrot.slane %v3665_v59, 6  ;;  %v1506_v58 = vrot.slane %v3665_v59, 2 }
 0xd35   :  { %2863 = vmatmul.mubr.msk.f32.vlgmr.msra.gmra.mrb[14].mxu0 %vm76_vm1, %v1362_v61 }
 0xd36   :  { %3030 = vmatpush3.bf16.msra.mxu0 %v3432_v24  ;;  %2884 = vmatprep.mubr.msk.f32.mxu0 %vm3270_vm0, %v3271_v8 }
 0xd37   :  { %3031 = vmatprep.subr.bf16.mxu0 %v3269_v3 }
 0xd3a   :  { %3033 = vmatpush3.bf16.msra.mxu0 %v3446_v28 }
 0xd3b   :  { %3040 = vmatprep.subr.bf16.mxu0 %v3269_v3 }
 0xda1   :  { %v1288_v45 = vpop.permute.xlu1 %1287 }
 0xda2   :  { %2852 = vmatmul.mubr.msk.f32.vlgmr.msra.gmra.mrb[10].mxu1 %vm76_vm1, %v1288_v45 }
 0xda3   :  { %3024 = vmatpush3.bf16.msra.mxu1 %v3382_v9  ;;  %2873 = vmatprep.mubr.msk.f32.mxu1 %vm3270_vm0, %v3271_v8 }
 0xda4   :  { %3025 = vmatprep.subr.bf16.mxu1 %v3269_v3 }
 0xda7   :  { %3027 = vmatpush3.bf16.msra.mxu1 %v3404_v18 }
 0xda8   :  { %3034 = vmatprep.subr.bf16.mxu1 %v3269_v3 }
 0xe08   :  { %v1431_v62 = vpop.f32.mrb[14].mxu0 }
 0xe09   :  { %v1446_v63 = vrot.slane %v1431_v62, 4  ;;  %v1477_v0 = vadd.f32 %v1431_v62, %v3483_v56  ;;  %v2864_v1 = vpop.f32.mrb[15].mxu0 }
 0xe0b   :  { %1447 = vrot.lane.b32.xlu0 %v1446_v63, %s3273_s30  ;;  %v1479_v2 = vrot.slane %v1477_v0, 4 }
 0xe0f   :  { %1480 = vrot.lane.b32.xlu0 %v1479_v2, %s3274_s0  ;;  %v1496_v2 = vrot.slane %v3660_v52, 6 }
 0xe75   :  { %v1357_v4 = vpop.f32.mrb[10].mxu1 }
 0xe76   :  { %v1464_v5 = vadd.f32 %v1357_v4, %v3459_v29  ;;  %v2853_v6 = vpop.f32.mrb[11].mxu1  ;;  %v1436_v25 = vrot.slane %v1357_v4, 6 }
 0xe78   :  { %v1466_v7 = vrot.slane %v1464_v5, 6  ;;  %v1438_v26 = vadd.f32 %v1436_v25, %v3488_v60 }
 0xe7a   :  { %1467 = vrot.lane.b32.xlu1 %v1466_v7, %s3272_s3  ;;  %v2611_v30 = vmul.f32 -1.442695, %v1438_v26 }
 0xe7d   :  { %v1448_v11 = vpop.permute.xlu0 %1447 }
 0xe7e   :  { %v1450_v12 = vadd.f32 %v1448_v11, %v3473_v40  ;;  %v1457_v16 = vadd.f32 %v1448_v11, %v3652_v31 }
 0xe80   :  { %v2612_v15 = vmul.f32 -1.442695, %v1450_v12  ;;  %v2613_v48 = vmul.f32 -1.442695, %v1457_v16 }
 0xe81   :  { %v1481_v22 = vpop.permute.xlu0 %1480 }
 0xe82   :  { %3163 = vpow2.f32 %v2612_v15 }
 0xe8c   :  { %v3164_v19 = vpop.eup %3163 }
 0xe8d   :  { %v1454_v20 = vadd.f32 1.0, %v3164_v19 }
 0xe8f   :  { %3165 = vrcp.f32 %v1454_v20 }
 0xe90   :  { %3167 = vpow2.f32 %v2611_v30 }
 0xe99   :  { %v3166_v21 = vpop.eup %3165 }
 0xe9a   :  { %v1483_v23 = vmul.f32 %v3166_v21, %v1481_v22  ;;  %v3168_v32 = vpop.eup %3167 }
 0xe9b   :  { %v1442_v35 = vadd.f32 1.0, %v3168_v32 }
 0xe9c   :  { %1485 = vrot.lane.b32.xlu0 %v1483_v23, %s3272_s3 }
 0xe9d   :  { %3169 = vrcp.f32 %v1442_v35 }
 0xea7   :  { %v3170_v38 = vpop.eup %3169 }
 0xea8   :  { %v1490_v1 = vsub.f32 1.0, %v3170_v38  ;;  %v1498_v6 = vmul.f32 %v3170_v38, %v1496_v2 }
 0xeec   :  { %v1468_v39 = vpop.permute.xlu1 %1467 }
 0xeed   :  { %v1470_v41 = vmul.f32 %v3170_v38, %v1468_v39 }
 0xeef   :  { %1472 = vrot.lane.b32.xlu1 %v1470_v41, %s3272_s3 }
 0xf0e   :  { %v1486_v43 = vpop.permute.xlu0 %1485 }
 0xf0f   :  { %v1488_v46 = vadd.f32 %v1486_v43, %v3652_v31 }
 0xf11   :  { %3171 = vtanh.f32 %v1488_v46 }
 0xf1b   :  { %v3172_v47 = vpop.eup %3171 }
 0xf1c   :  { %1502 = vrot.lane.b32.xlu0 %v3172_v47, %s3273_s30 }
 0xf61   :  { %v1473_v34 = vpop.permute.xlu1 %1472 }
 0xf62   :  { %v1475_v14 = vadd.f32 %v1473_v34, %v3488_v60 }
 0xf64   :  { %3173 = vtanh.f32 %v1475_v14 }
 0xf65   :  { %3175 = vpow2.f32 %v2613_v48 }
 0xf6e   :  { %v3174_v51 = vpop.eup %3173 }
 0xf6f   :  { %1492 = vrot.lane.b32.xlu1 %v3174_v51, %s3273_s30  ;;  %v3176_v53 = vpop.eup %3175 }
 0xf70   :  { %v1461_v55 = vadd.f32 1.0, %v3176_v53 }
 0xf72   :  { %3177 = vrcp.f32 %v1461_v55 }
 0xf7c   :  { %v3178_v50 = vpop.eup %3177 }
 0xf7d   :  { %v1500_v57 = vsub.f32 1.0, %v3178_v50  ;;  %v1508_v45 = vmul.f32 %v3178_v50, %v1506_v58 }
 0xf8e   :  { %v1503_v61 = vpop.permute.xlu0 %1502 }
 0xf8f   :  { %v1505_v62 = vmul.f32 %v1503_v61, %v1500_v57 }
 0xf91   :  { %v3697_v63 = vadd.f32 %v1508_v45, %v1505_v62 }
 0xf93   :  { %v1587_v0 = vrot.slane %v3697_v63, 4 }
 0xf95   :  { %2885 = vmatmul.mubr.msk.f32.vlgmr.msra.gmra.mrb[16].mxu0 %vm76_vm1, %v1587_v0  ;;  %v1731_v0 = vrot.slane %v3697_v63, 2 }
 0xf96   :  { %3042 = vmatpush3.bf16.msra.mxu0 %v3432_v24  ;;  %2906 = vmatprep.mubr.msk.f32.mxu0 %vm3270_vm0, %v3271_v8 }
 0xf97   :  { %3043 = vmatprep.subr.bf16.mxu0 %v3269_v3 }
 0xf9a   :  { %3045 = vmatpush3.bf16.msra.mxu0 %v3446_v28 }
 0xfe1   :  { %v1493_v4 = vpop.permute.xlu1 %1492 }
 0xfe2   :  { %v1495_v5 = vmul.f32 %v1493_v4, %v1490_v1 }
 0xfe4   :  { %v3707_v7 = vadd.f32 %v1498_v6, %v1495_v5 }
 0xfe6   :  { %v1511_v11 = vrot.slane %v3707_v7, 2 }
 0xfe8   :  { %1512 = vrot.lane.b32.xlu1 %v1511_v11, %s3273_s30 }
0x105a   :  { %v1513_v24 = vpop.permute.xlu1 %1512 }
0x105b   :  { %2874 = vmatmul.mubr.msk.f32.vlgmr.msra.gmra.mrb[12].mxu1 %vm76_vm1, %v1513_v24 }
0x105c   :  { %3036 = vmatpush3.bf16.msra.mxu1 %v3382_v9  ;;  %2895 = vmatprep.mubr.msk.f32.mxu1 %vm3270_vm0, %v3271_v8 }
0x105d   :  { %3037 = vmatprep.subr.bf16.mxu1 %v3269_v3 }
0x1060   :  { %3039 = vmatpush3.bf16.msra.mxu1 %v3404_v18 }
0x1068   :  { %v1656_v28 = vpop.f32.mrb[16].mxu0 }
0x1069   :  { %v1671_v12 = vrot.slane %v1656_v28, 6  ;;  %v1702_v15 = vadd.f32 %v1656_v28, %v3483_v56  ;;  %v2886_v19 = vpop.f32.mrb[17].mxu0 }
0x106b   :  { %v1704_v20 = vrot.slane %v1702_v15, 6  ;;  %1672 = vrot.lane.b32.xlu0 %v1671_v12, %s3273_s30  ;;  %v1721_v15 = vrot.slane %v3707_v7, 6 }
0x106d   :  { %1705 = vrot.lane.b32.xlu1 %v1704_v20, %s3274_s0 }
0x10dd   :  { %v1673_v21 = vpop.permute.xlu0 %1672 }
0x10de   :  { %v1675_v9 = vadd.f32 %v1673_v21, %v3473_v40  ;;  %v1682_v50 = vadd.f32 %v1673_v21, %v3652_v31 }
0x10df   :  { %v1706_v18 = vpop.permute.xlu1 %1705 }
0x10e0   :  { %v2617_v22 = vmul.f32 -1.442695, %v1675_v9  ;;  %v2618_v57 = vmul.f32 -1.442695, %v1682_v50 }
0x10e2   :  { %3179 = vpow2.f32 %v2617_v22 }
0x10ec   :  { %v3180_v23 = vpop.eup %3179 }
0x10ed   :  { %v1679_v25 = vadd.f32 1.0, %v3180_v23 }
0x10ef   :  { %3181 = vrcp.f32 %v1679_v25 }
0x10f9   :  { %v3182_v26 = vpop.eup %3181 }
0x10fa   :  { %v1708_v30 = vmul.f32 %v3182_v26, %v1706_v18 }
0x10fc   :  { %1710 = vrot.lane.b32.xlu1 %v1708_v30, %s3272_s3 }
0x112e   :  { %v1582_v32 = vpop.f32.mrb[12].mxu1 }
0x112f   :  { %v1689_v35 = vadd.f32 %v1582_v32, %v3459_v29  ;;  %v2875_v38 = vpop.f32.mrb[13].mxu1  ;;  %v1661_v47 = vrot.slane %v1582_v32, 4 }
0x1131   :  { %v1691_v39 = vrot.slane %v1689_v35, 4  ;;  %v1663_v34 = vadd.f32 %v1661_v47, %v3488_v60 }
0x1133   :  { %1692 = vrot.lane.b32.xlu0 %v1691_v39, %s3272_s3  ;;  %v2616_v14 = vmul.f32 -1.442695, %v1663_v34 }
0x116e   :  { %v1711_v41 = vpop.permute.xlu1 %1710 }
0x116f   :  { %v1713_v43 = vadd.f32 %v1711_v41, %v3652_v31 }
0x1171   :  { %3183 = vtanh.f32 %v1713_v43 }
0x1172   :  { %3185 = vpow2.f32 %v2616_v14 }
0x117b   :  { %v3184_v46 = vpop.eup %3183 }
0x117c   :  { %1727 = vrot.lane.b32.xlu1 %v3184_v46, %s3273_s30  ;;  %v3186_v16 = vpop.eup %3185 }
0x117d   :  { %v1667_v48 = vadd.f32 1.0, %v3186_v16 }
0x117f   :  { %3187 = vrcp.f32 %v1667_v48 }
0x1180   :  { %3189 = vpow2.f32 %v2618_v57 }
0x1189   :  { %v3188_v51 = vpop.eup %3187 }
0x118a   :  { %v3190_v58 = vpop.eup %3189  ;;  %v1715_v12 = vsub.f32 1.0, %v3188_v51  ;;  %v1723_v20 = vmul.f32 %v3188_v51, %v1721_v15 }
0x118b   :  { %v1686_v61 = vadd.f32 1.0, %v3190_v58 }
0x118d   :  { %3191 = vrcp.f32 %v1686_v61 }
0x1197   :  { %v3192_v45 = vpop.eup %3191 }
0x1198   :  { %v1725_v62 = vsub.f32 1.0, %v3192_v45  ;;  %v1733_v2 = vmul.f32 %v3192_v45, %v1731_v0 }
0x11a5   :  { %v1693_v53 = vpop.permute.xlu0 %1692 }
0x11a6   :  { %v1695_v55 = vmul.f32 %v3188_v51, %v1693_v53 }
0x11a8   :  { %1697 = vrot.lane.b32.xlu0 %v1695_v55, %s3272_s3 }
0x11ee   :  { %v1728_v1 = vpop.permute.xlu1 %1727 }
0x11ef   :  { %v1730_v4 = vmul.f32 %v1728_v1, %v1725_v62 }
0x11f1   :  { %v3730_v5 = vadd.f32 %v1733_v2, %v1730_v4 }
0x11f3   :  { %v1812_v6 = vrot.slane %v3730_v5, 2 }
0x11f5   :  { %2907 = vmatmul.mubr.msk.f32.vlgmr.msra.gmra.mrb[18].mxu0 %vm76_vm1, %v1812_v6 }
0x121a   :  { %v1698_v11 = vpop.permute.xlu0 %1697 }
0x121b   :  { %v1700_v24 = vadd.f32 %v1698_v11, %v3488_v60 }
0x121d   :  { %3193 = vtanh.f32 %v1700_v24 }
0x1227   :  { %v3194_v28 = vpop.eup %3193 }
0x1228   :  { %1717 = vrot.lane.b32.xlu0 %v3194_v28, %s3273_s30 }
0x129a   :  { %v1718_v19 = vpop.permute.xlu0 %1717 }
0x129b   :  { %v1720_v21 = vmul.f32 %v1718_v19, %v1715_v12 }
0x129d   :  { %v3737_v9 = vadd.f32 %v1723_v20, %v1720_v21 }
0x129f   :  { %v1736_v22 = vrot.slane %v3737_v9, 4 }
0x12a1   :  { %1737 = vrot.lane.b32.xlu1 %v1736_v22, %s3273_s30 }
0x12c8   :  { %v1881_v23 = vpop.f32.mrb[18].mxu0 }
0x12c9   :  { %v1926_v25 = vadd.f32 %v1881_v23, %v3483_v56  ;;  %1896 = vrot.lane.b32.xlu0 %v1881_v23, %s3273_s30  ;;  %v2908_v26 = vpop.f32.mrb[19].mxu0 }
0x12cb   :  { %1928 = vrot.lane.b32.xlu1 %v1926_v25, %s3274_s0  ;;  %v2037_v25 = vld [vmem:[%s3935_s7 + $0x8] sm:$0xff] }
0x1313   :  { %v1738_v18 = vpop.permute.xlu1 %1737 }
0x1314   :  { %2896 = vmatmul.mubr.msk.f32.vlgmr.msra.gmra.mrb[14].mxu1 %vm76_vm1, %v1738_v18  ;;  %v2038_v18 = vld [vmem:[%s3935_s7 + $0x10] sm:$0xff] }
0x133b   :  { %v1897_v30 = vpop.permute.xlu0 %1896 }
0x133c   :  { %v1899_v32 = vadd.f32 %v1897_v30, %v3473_v40  ;;  %v1906_v51 = vadd.f32 %v1897_v30, %v3652_v31  ;;  %v2039_v30 = vld [vmem:[%s3935_s7 + $0x18] sm:$0xff] }
0x133d   :  { %v1929_v43 = vpop.permute.xlu1 %1928 }
0x133e   :  { %v2622_v35 = vmul.f32 -1.442695, %v1899_v32  ;;  %v2623_v53 = vmul.f32 -1.442695, %v1906_v51  ;;  %v3050_v32 = vpack.c.bf16 %v2039_v30, %v2038_v18  ;;  %v2130_v51 = vld [vmem:[%s3937_s9] sm:$0xff] }
0x1340   :  { %3195 = vpow2.f32 %v2622_v35 }
0x134a   :  { %v3196_v38 = vpop.eup %3195 }
0x134b   :  { %v1903_v39 = vadd.f32 1.0, %v3196_v38  ;;  %v1944_v38 = vrot.slane %v3737_v9, 6 }
0x134d   :  { %3197 = vrcp.f32 %v1903_v39 }
0x1357   :  { %v3198_v41 = vpop.eup %3197 }
0x1358   :  { %v1931_v46 = vmul.f32 %v3198_v41, %v1929_v43 }
0x135a   :  { %1933 = vrot.lane.b32.xlu1 %v1931_v46, %s3272_s3 }
0x13cc   :  { %v1934_v56 = vpop.permute.xlu1 %1933 }
0x13cd   :  { %v1936_v47 = vadd.f32 %v1934_v56, %v3652_v31 }
0x13cf   :  { %3199 = vtanh.f32 %v1936_v47 }
0x13d0   :  { %3201 = vpow2.f32 %v2623_v53  ;;  %v2131_v53 = vld [vmem:[%s3937_s9 + $0x8] sm:$0xff] }
0x13d9   :  { %v3200_v34 = vpop.eup %3199 }
0x13da   :  { %1950 = vrot.lane.b32.xlu1 %v3200_v34, %s3273_s30  ;;  %v3202_v55 = vpop.eup %3201 }
0x13db   :  { %v1910_v57 = vadd.f32 1.0, %v3202_v55  ;;  %v2132_v55 = vld [vmem:[%s3937_s9 + $0x10] sm:$0xff] }
0x13dd   :  { %3203 = vrcp.f32 %v1910_v57  ;;  %v2133_v57 = vld [vmem:[%s3937_s9 + $0x18] sm:$0xff] }
0x13e7   :  { %v1807_v14 = vpop.f32.mrb[14].mxu1  ;;  %v3204_v45 = vpop.eup %3203 }
0x13e8   :  { %v1913_v40 = vadd.f32 %v1807_v14, %v3459_v29  ;;  %v2897_v16 = vpop.f32.mrb[15].mxu1  ;;  %v1886_v50 = vrot.slane %v1807_v14, 2  ;;  %v1948_v62 = vsub.f32 1.0, %v3204_v45  ;;  %v1955_v1 = vmul.f32 %v3204_v45, %v1812_v6 }
0x13ea   :  { %v1915_v48 = vrot.slane %v1913_v40, 2  ;;  %v1888_v58 = vadd.f32 %v1886_v50, %v3488_v60  ;;  %v3054_v50 = vpack.c.bf16 %v2131_v53, %v2130_v51 }
0x13ec   :  { %1916 = vrot.lane.b32.xlu0 %v1915_v48, %s3272_s3  ;;  %v2621_v61 = vmul.f32 -1.442695, %v1888_v58  ;;  %v3058_v58 = vpack.c.bf16 %v2133_v57, %v2132_v55  ;;  %3055 = vmatprep.subr.bf16.mxu0 %v3054_v50 }
0x13ed   :  { %3057 = vmatpush3.bf16.msra.mxu0 %v3054_v50 }
0x13ee   :  { %3205 = vpow2.f32 %v2621_v61  ;;  %3059 = vmatprep.subr.bf16.mxu0 %v3058_v58  ;;  %v2624_v61 = vld [vmem:[%s3936_s8] ss:$0 sm:$0xff] }
0x13f1   :  { %3061 = vmatpush3.bf16.msra.mxu0 %v3058_v58 }
0x13f2   :  { %3070 = vmatprep.subr.bf16.mxu0 %v3269_v3 }
0x13f8   :  { %v3206_v29 = vpop.eup %3205 }
0x13f9   :  { %v1892_v11 = vadd.f32 1.0, %v3206_v29 }
0x13fb   :  { %3207 = vrcp.f32 %v1892_v11  ;;  %v2330_v11 = vld [vmem:[%s3938_s10 + $0x18] sm:$0xff] }
0x1405   :  { %v3208_v31 = vpop.eup %3207 }
0x1406   :  { %v1938_v35 = vsub.f32 1.0, %v3208_v31  ;;  %v1946_v43 = vmul.f32 %v3208_v31, %v1944_v38 }
0x144c   :  { %v1951_v0 = vpop.permute.xlu1 %1950 }
0x144d   :  { %v1953_v2 = vmul.f32 %v1951_v0, %v1948_v62 }
0x144f   :  { %v1956_v4 = vadd.f32 %v1955_v1, %v1953_v2 }
0x1451   :  { %1958 = vrot.lane.b32.xlu1 %v1956_v4, %s3274_s0  ;;  %v2328_v4 = vld [vmem:[%s3938_s10 + $0x8] sm:$0xff] }
0x1455   :  { %1966 = vrot.lane.b32.xlu1 %v3697_v63, %s3274_s0 }
0x1459   :  { %1974 = vrot.lane.b32.xlu1 %v3623_v54, %s3274_s0 }
0x145d   :  { %1982 = vrot.lane.b32.xlu1 %v3551_v42, %s3274_s0 }
0x145e   :  { %v1917_v24 = vpop.permute.xlu0 %1916 }
0x145f   :  { %v1919_v28 = vmul.f32 %v3208_v31, %v1917_v24  ;;  %v2327_v31 = vld [vmem:[%s3938_s10] sm:$0xff]  ;;  %v3062_v24 = vpack.c.bf16 %v2330_v11, %v2328_v4 }
0x1461   :  { %1921 = vrot.lane.b32.xlu0 %v1919_v28, %s3272_s3  ;;  %v2329_v28 = vld [vmem:[%s3938_s10 + $0x10] sm:$0xff] }
0x1465   :  { %1962 = vrot.lane.b32.xlu0 %v3730_v5, %s3274_s0 }
0x1469   :  { %1970 = vrot.lane.b32.xlu0 %v3665_v59, %s3274_s0 }
0x146d   :  { %1978 = vrot.lane.b32.xlu0 %v3585_v49, %s3274_s0 }
0x14c3   :  { %v1959_v63 = vpop.permute.xlu1 %1958 }
0x14c4   :  { %v1961_v54 = vadd.f32 %v1959_v63, %v3491_v10  ;;  %v2334_v63 = vld [vmem:[%s3938_s10 + $0x38] sm:$0xff] }
0x14c6   :  { %1991 = vrot.lane.b32.xlu1 %v1961_v54, %s3273_s30  ;;  %v3064_v54 = vpack.c.bf16 %v2329_v28, %v2327_v31 }
0x14c7   :  { %v1967_v42 = vpop.permute.xlu1 %1966 }
0x14c8   :  { %v1969_v6 = vadd.f32 %v1967_v42, %v3574_v27 }
0x14ca   :  { %2003 = vrot.lane.b32.xlu1 %v1969_v6, %s3273_s30  ;;  %v2331_v6 = vld [vmem:[%s3938_s10 + $0x20] sm:$0xff] }
0x14cb   :  { %v1975_v12 = vpop.permute.xlu1 %1974 }
0x14cc   :  { %v1977_v15 = vadd.f32 %v1975_v12, %v3660_v52  ;;  %v2333_v12 = vld [vmem:[%s3938_s10 + $0x30] sm:$0xff] }
0x14ce   :  { %2015 = vrot.lane.b32.xlu1 %v1977_v15, %s3273_s30  ;;  %v3068_v15 = vpack.c.bf16 %v2333_v12, %v2331_v6 }
0x14cf   :  { %v1983_v5 = vpop.permute.xlu1 %1982 }
0x14d0   :  { %v1985_v59 = vadd.f32 %v1983_v5, %v3737_v9  ;;  %v2633_v5 = vld [vmem:[%s3941_s13] ss:$0 sm:$0xff] }
0x14d2   :  { %2025 = vrot.lane.b32.xlu1 %v1985_v59, %s3273_s30 }
0x14d3   :  { %v1922_v49 = vpop.permute.xlu0 %1921 }
0x14d4   :  { %v1924_v10 = vadd.f32 %v1922_v49, %v3488_v60 }
0x14d6   :  { %3209 = vtanh.f32 %v1924_v10  ;;  %2453 = vrot.lane.b32.xlu1 %v2633_v5, %s3273_s30 }
0x14d7   :  { %v1963_v20 = vpop.permute.xlu0 %1962 }
0x14d8   :  { %v1965_v52 = vadd.f32 %v1963_v20, %v3536_v17 }
0x14db   :  { %v1971_v27 = vpop.permute.xlu0 %1970 }
0x14dc   :  { %v1973_v21 = vadd.f32 %v1971_v27, %v3615_v44 }
0x14df   :  { %v1979_v22 = vpop.permute.xlu0 %1978 }
0x14e0   :  { %v3210_v19 = vpop.eup %3209  ;;  %v1981_v60 = vadd.f32 %v1979_v22, %v3707_v7  ;;  %v2036_v7 = vld [vmem:[%s3935_s7] sm:$0xff] }
0x14e1   :  { %1940 = vrot.lane.b32.xlu0 %v3210_v19, %s3273_s30  ;;  %v3046_v26 = vpack.c.bf16 %v2037_v25, %v2036_v7 }
0x14e3   :  { %3047 = vmatprep.subr.bf16.mxu1 %v3046_v26 }
0x14e4   :  { %3049 = vmatpush3.bf16.msra.mxu1 %v3046_v26 }
0x14e5   :  { %1986 = vrot.lane.b32.xlu0 %v3514_v33, %s3274_s0  ;;  %3051 = vmatprep.subr.bf16.mxu1 %v3050_v32 }
0x14e8   :  { %3053 = vmatpush3.bf16.msra.mxu1 %v3050_v32 }
0x14e9   :  { %1997 = vrot.lane.b32.xlu0 %v1965_v52, %s3273_s30  ;;  %3063 = vmatprep.subr.bf16.mxu1 %v3062_v24 }
0x14ed   :  { %2009 = vrot.lane.b32.xlu0 %v1973_v21, %s3273_s30 }
0x14f1   :  { %2020 = vrot.lane.b32.xlu0 %v1981_v60, %s3273_s30 }
0x1538   :  { %v3785_v23 = vpop.permute.xlu1 %1991 }
0x1539   :  { %1995 = vst.msk [vmem:[#allocation2] sm:$0x3] %vm1994_vm2, %v3785_v23 }
0x153c   :  { %v3788_v33 = vpop.permute.xlu1 %2003 }
0x153d   :  { %2007 = vst.msk [vmem:[#allocation2] sm:$0x30] %vm2006_vm3, %v3788_v33 }
0x1540   :  { %v3791_v17 = vpop.permute.xlu1 %2015 }
0x1541   :  { %2018 = vst.msk [vmem:[#allocation2 + $0x8] sm:$0x3] %vm1994_vm2, %v3791_v17 }
0x1544   :  { %v3794_v44 = vpop.permute.xlu1 %2025 }
0x1545   :  { %2028 = vst.msk [vmem:[#allocation2 + $0x8] sm:$0x30] %vm2006_vm3, %v3794_v44 }
0x1553   :  { %v1941_v39 = vpop.permute.xlu0 %1940 }
0x1554   :  { %v1943_v41 = vmul.f32 %v1941_v39, %v1938_v35 }
0x1556   :  { %v1947_v46 = vadd.f32 %v1946_v43, %v1943_v41 }
0x1557   :  { %v1987_v56 = vpop.permute.xlu0 %1986 }
0x1558   :  { %v1989_v47 = vadd.f32 %v1987_v56, %v1947_v46 }
0x155a   :  { %2030 = vrot.lane.b32.xlu0 %v1989_v47, %s3273_s30 }
0x155b   :  { %v3811_v34 = vpop.permute.xlu0 %1997 }
0x155c   :  { %2001 = vst.msk [vmem:[#allocation2] sm:$0xc] %vm2000_vm4, %v3811_v34 }
0x155f   :  { %v3814_v14 = vpop.permute.xlu0 %2009 }
0x1560   :  { %2013 = vst.msk [vmem:[#allocation2] sm:$0xc0] %vm2012_vm5, %v3814_v14 }
0x1563   :  { %v3817_v9 = vpop.permute.xlu0 %2020 }
0x1564   :  { %2023 = vst.msk [vmem:[#allocation2 + $0x8] sm:$0xc] %vm2000_vm4, %v3817_v9 }
0x1567   :  { %v2034_v40 = vld [vmem:[#allocation2] sm:$0xff] }
0x1568   :  { %2917 = vmatprep.mubr.msk.f32.mxu1 %vm76_vm1, %v2034_v40 }
0x15cc   :  { %v3821_v16 = vpop.permute.xlu0 %2030 }
0x15cd   :  { %2033 = vst.msk [vmem:[#allocation2 + $0x8] sm:$0xc0] %vm2012_vm5, %v3821_v16 }
0x15d4   :  { %v2035_v48 = vld [vmem:[#allocation2 + $0x8] sm:$0xff] }
0x15d5   :  { %2918 = vmatmul.mubr.msk.f32.vlgmr.msra.gmra.mrb[16].mxu1 %vm76_vm1, %v2035_v48 }
0x15d6   :  { %2414 = vmatprep.mubr.f32.mxu1 %v3271_v8  ;;  %3065 = vmatpush1.bf16.msra.mxu1 %v3064_v54 }
0x16a8   :  { %v2919_v45 = vpop.f32.mrb[16].mxu1 }
0x16a9   :  { %v2125_v62 = vadd.f32 %v2919_v45, %v2624_v61  ;;  %v2119_v0 = vpop.f32.mrb[17].mxu1 }
0x16aa   :  { %v2120_v29 = vadd.f32 %v2624_v61, %v2119_v0 }
0x16ac   :  { %3211 = vtanh.f32 %v2120_v29 }
0x16ad   :  { %3213 = vtanh.f32 %v2125_v62 }
0x16b6   :  { %v3212_v1 = vpop.eup %3211 }
0x16b7   :  { %v3214_v2 = vpop.eup %3213  ;;  %2928 = vmatprep.mubr.msk.f32.mxu0 %vm76_vm1, %v3212_v1 }
0x16b8   :  { %2929 = vmatmul.mubr.msk.f32.vlgmr.msra.gmra.mrb[20].mxu0 %vm76_vm1, %v3214_v2 }
0x16b9   :  { %2939 = vmatprep.mubr.msk.f32.mxu0 %vm3270_vm0, %v3271_v8  ;;  %v2332_v8 = vld [vmem:[%s3938_s10 + $0x28] sm:$0xff] }
0x16ba   :  { %v3066_v42 = vpack.c.bf16 %v2334_v63, %v2332_v8 }
0x16bc   :  { %3067 = vmatprep.subr.bf16.mxu1 %v3066_v42 }
0x16bd   :  { %3069 = vmatpush1.bf16.msra.mxu1 %v3068_v15 }
0x178b   :  { %v2930_v59 = vpop.f32.mrb[20].mxu0 }
0x178c   :  { %v2206_v49 = vpop.f32.mrb[21].mxu0  ;;  %v2227_v22 = vrot.slane %v2930_v59, 2  ;;  %v2230_v7 = vrot.slane %v2930_v59, 4  ;;  %v2233_v26 = vrot.slane %v2930_v59, 6 }
0x178d   :  { %v2216_v10 = vrot.slane %v2206_v49, 2  ;;  %v2219_v20 = vrot.slane %v2206_v49, 4  ;;  %v2222_v52 = vrot.slane %v2206_v49, 6 }
0x178f   :  { %v2218_v19 = vmax.f32 %v2206_v49, %v2216_v10 }
0x1791   :  { %v2221_v27 = vmax.f32 %v2218_v19, %v2219_v20 }
0x1793   :  { %v2224_v21 = vmax.f32 %v2221_v27, %v2222_v52 }
0x1795   :  { %v2225_v60 = vmax.f32 %v2224_v21, %v2930_v59 }
0x1797   :  { %v2229_v25 = vmax.f32 %v2225_v60, %v2227_v22 }
0x1799   :  { %v2232_v18 = vmax.f32 %v2229_v25, %v2230_v7 }
0x179b   :  { %v2235_v30 = vmax.f32 %v2232_v18, %v2233_v26 }
0x179d   :  { %v2236_v32 = vsub.f32 %v2206_v49, %v2235_v30  ;;  %v2240_v35 = vrot.slane %v2235_v30, 6  ;;  %v2245_v38 = vrot.slane %v2235_v30, 4  ;;  %v2250_v39 = vrot.slane %v2235_v30, 2 }
0x179e   :  { %v2255_v41 = vsub.f32 %v2930_v59, %v2235_v30 }
0x179f   :  { %v2237_v43 = vmul.f32 1.442695, %v2236_v32  ;;  %v2242_v46 = vsub.f32 %v2206_v49, %v2240_v35  ;;  %v2247_v56 = vsub.f32 %v2206_v49, %v2245_v38  ;;  %v2252_v47 = vsub.f32 %v2206_v49, %v2250_v39 }
0x17a0   :  { %v2258_v40 = vsub.f32 %v2930_v59, %v2240_v35  ;;  %v2261_v48 = vsub.f32 %v2930_v59, %v2245_v38  ;;  %v2264_v51 = vsub.f32 %v2930_v59, %v2250_v39  ;;  %v2256_v58 = vmul.f32 1.442695, %v2255_v41 }
0x17a1   :  { %v2243_v53 = vmul.f32 1.442695, %v2242_v46  ;;  %v2248_v55 = vmul.f32 1.442695, %v2247_v56  ;;  %v2253_v50 = vmul.f32 1.442695, %v2252_v47  ;;  %3215 = vpow2.f32 %v2237_v43 }
0x17a2   :  { %v2259_v57 = vmul.f32 1.442695, %v2258_v40  ;;  %v2262_v61 = vmul.f32 1.442695, %v2261_v48  ;;  %v2265_v45 = vmul.f32 1.442695, %v2264_v51  ;;  %v2454_v51 = vpop.permute.xlu1 %2453 }
0x17a3   :  { %3217 = vpow2.f32 %v2243_v53  ;;  %v2631_v53 = vld [vmem:[%s3940_s12] ss:$0 sm:$0xff] }
0x17a4   :  { %3219 = vpow2.f32 %v2248_v55 }
0x17a5   :  { %3221 = vpow2.f32 %v2253_v50 }
0x17a6   :  { %3223 = vpow2.f32 %v2259_v57 }
0x17a7   :  { %3225 = vpow2.f32 %v2256_v58 }
0x17a8   :  { %3227 = vpow2.f32 %v2262_v61 }
0x17a9   :  { %3229 = vpow2.f32 %v2265_v45 }
0x17ab   :  { %v3216_v62 = vpop.eup %3215 }
0x17ac   :  { %v2293_v11 = vmul.f32 %v3216_v62, %v3785_v23 }
0x17ad   :  { %v3218_v0 = vpop.eup %3217 }
0x17ae   :  { %v3220_v29 = vpop.eup %3219  ;;  %v2268_v1 = vrot.slane %v3218_v0, 2  ;;  %v2294_v2 = vmul.f32 %v3218_v0, %v3811_v34 }
0x17af   :  { %v3222_v4 = vpop.eup %3221  ;;  %v2299_v31 = vmul.f32 %v3220_v29, %v3788_v33  ;;  %v2272_v28 = vrot.slane %v3220_v29, 4 }
0x17b0   :  { %v2270_v24 = vadd.f32 %v3216_v62, %v2268_v1  ;;  %v2296_v8 = vrot.slane %v2294_v2, 2  ;;  %v2304_v63 = vmul.f32 %v3222_v4, %v3814_v14  ;;  %v3224_v54 = vpop.eup %3223  ;;  %v2276_v6 = vrot.slane %v3222_v4, 6 }
0x17b1   :  { %v3226_v42 = vpop.eup %3225  ;;  %v2301_v5 = vrot.slane %v2299_v31, 4  ;;  %v2311_v19 = vmul.f32 %v3224_v54, %v3817_v9  ;;  %v2281_v27 = vrot.slane %v3224_v54, 2  ;;  %v2482_v31 = vld [vmem:[%s3942_s14 + $0x10] sm:$0xff] }
0x17b2   :  { %v2274_v12 = vadd.f32 %v2272_v28, %v2270_v24  ;;  %v2298_v15 = vadd.f32 %v2296_v8, %v2293_v11  ;;  %v3228_v59 = vpop.eup %3227  ;;  %v2306_v34 = vrot.slane %v2304_v63, 6  ;;  %v2309_v33 = vmul.f32 %v3226_v42, %v3791_v17  ;;  %v2483_v28 = vld [vmem:[%s3942_s14 + $0x18] sm:$0xff] }
0x17b3   :  { %v3230_v23 = vpop.eup %3229  ;;  %v2316_v14 = vmul.f32 %v3228_v59, %v3794_v44  ;;  %v2285_v21 = vrot.slane %v3228_v59, 4  ;;  %v2313_v7 = vrot.slane %v2311_v19, 2  ;;  %v2335_v44 = vld [vmem:[%s3939_s11] sm:$0x3]  ;;  %v3074_v8 = vpack.c.bf16 %v2483_v28, %v2482_v31 }
0x17b4   :  { %v2278_v49 = vadd.f32 %v2276_v6, %v2274_v12  ;;  %v2303_v10 = vadd.f32 %v2301_v5, %v2298_v15  ;;  %v2321_v25 = vmul.f32 %v3230_v23, %v3821_v16  ;;  %v2289_v18 = vrot.slane %v3230_v23, 6 }
0x17b5   :  { %v2318_v32 = vrot.slane %v2316_v14, 4  ;;  %v2340_v16 = vrot.slane %v2335_v44, %v68_v37  ;;  %v2344_v37 = vrot.slane %v2335_v44, %v72_v13  ;;  %v2481_v13 = vld [vmem:[%s3942_s14 + $0x8] sm:$0xff] }
0x17b6   :  { %v2279_v20 = vadd.f32 %v3226_v42, %v2278_v49  ;;  %v2308_v52 = vadd.f32 %v2306_v34, %v2303_v10  ;;  %v2323_v38 = vrot.slane %v2321_v25, 6  ;;  %v3071_v24 = vpack.c.bf16 %v2481_v13, %v2480_v36 }
0x17b8   :  { %v2283_v22 = vadd.f32 %v2281_v27, %v2279_v20  ;;  %v2310_v60 = vadd.f32 %v2309_v33, %v2308_v52  ;;  %3072 = vmatpush3.bf16.msra.mxu0 %v3071_v24 }
0x17b9   :  { %3073 = vmatprep.subr.bf16.mxu0 %v3269_v3  ;;  %v2634_v3 = vld [vmem:[%s3943_s15] ss:$0 sm:$0xff] }
0x17ba   :  { %v2287_v26 = vadd.f32 %v2285_v21, %v2283_v22  ;;  %v2315_v30 = vadd.f32 %v2313_v7, %v2310_v60 }
0x17bc   :  { %v2291_v35 = vadd.f32 %v2289_v18, %v2287_v26  ;;  %v2320_v9 = vadd.f32 %v2318_v32, %v2315_v30  ;;  %3075 = vmatpush3.bf16.msra.mxu0 %v3074_v8 }
0x17be   :  { %3231 = vrcp.f32 %v2291_v35  ;;  %v2325_v17 = vadd.f32 %v2323_v38, %v2320_v9 }
0x17c8   :  { %v3232_v39 = vpop.eup %3231 }
0x17c9   :  { %v2326_v41 = vmul.f32 %v3232_v39, %v2325_v17 }
0x17cb   :  { %2629 = vmatmul.mubr.msk.f32.vlgmr.msra.gmra.mrb[18].mxu1 %vm76_vm1, %v2326_v41 }
0x189e   :  { %v2416_v43 = vpop.f32.mrb[18].mxu1 }
0x189f   :  { %v2417_v46 = vadd.f32 %v2416_v43, %v2340_v16  ;;  %v2418_v56 = vpop.f32.mrb[19].mxu1 }
0x18a0   :  { %v2419_v58 = vadd.f32 %v2418_v56, %v2344_v37 }
0x18a1   :  { %v2630_v47 = vmul.f32 -1.442695, %v2417_v46 }
0x18a2   :  { %v2632_v2 = vmul.f32 -1.442695, %v2419_v58 }
0x18a3   :  { %3233 = vpow2.f32 %v2630_v47 }
0x18ad   :  { %v3234_v40 = vpop.eup %3233 }
0x18ae   :  { %v2424_v48 = vadd.f32 1.0, %v3234_v40 }
0x18b0   :  { %3235 = vrcp.f32 %v2424_v48 }
0x18ba   :  { %v3236_v55 = vpop.eup %3235 }
0x18bb   :  { %v2456_v50 = vmul.f32 %v3236_v55, %v2454_v51  ;;  %v2434_v57 = vmul.f32 %v3236_v55, %v2631_v53  ;;  %v2463_v15 = vsub.f32 1.0, %v3236_v55 }
0x18bd   :  { %2458 = vrot.lane.b32.xlu0 %v2456_v50, %s3272_s3  ;;  %2436 = vrot.lane.b32.xlu1 %v2434_v57, %s3272_s3 }
0x192f   :  { %v2459_v61 = vpop.permute.xlu0 %2458  ;;  %v2437_v45 = vpop.permute.xlu1 %2436 }
0x1930   :  { %v2461_v62 = vadd.f32 %v2459_v61, %v2419_v58  ;;  %v2439_v0 = vadd.f32 %v2437_v45, %v2417_v46 }
0x1932   :  { %3237 = vtanh.f32 %v2461_v62 }
0x1933   :  { %3239 = vtanh.f32 %v2439_v0 }
0x1934   :  { %3241 = vpow2.f32 %v2632_v2 }
0x193c   :  { %v3238_v29 = vpop.eup %3237 }
0x193d   :  { %v3240_v1 = vpop.eup %3239  ;;  %2471 = vrot.lane.b32.xlu0 %v3238_v29, %s3273_s30 }
0x193e   :  { %2465 = vrot.lane.b32.xlu1 %v3240_v1, %s3273_s30  ;;  %v3242_v4 = vpop.eup %3241 }
0x193f   :  { %v2444_v11 = vadd.f32 1.0, %v3242_v4 }
0x1941   :  { %3243 = vrcp.f32 %v2444_v11 }
0x194b   :  { %v3244_v63 = vpop.eup %3243 }
0x194c   :  { %v2469_v54 = vsub.f32 1.0, %v3244_v63 }
0x19af   :  { %v2472_v42 = vpop.permute.xlu0 %2471 }
0x19b0   :  { %v2474_v6 = vmul.f32 %v2472_v42, %v2469_v54  ;;  %v2466_v12 = vpop.permute.xlu1 %2465 }
0x19b1   :  { %v2468_v5 = vmul.f32 %v2466_v12, %v2463_v15 }
0x19b2   :  { %2476 = vrot.lane.b32.xlu0 %v2474_v6, %s3274_s0  ;;  %s3245_s0 = scalar_lea.vmem %s2575_s18, 32 }
0x19b3   :  { %p3246_p0 = scmp.ne.s32.totalorder %s2575_s18, %s3245_s0  ;;  %p3251_p2 = scmp.lt.s32.totalorder %s3245_s0, %s3245_s0 }
0x19b5   :  { %p3252_p3 = por %p3251_p2, %p3250_p1 }
0x19b7   :  { %p3253_p4 = pnand %p3252_p3, %p3246_p0 }
0x1a24   :  { %v2477_v59 = vpop.permute.xlu0 %2476 }
0x1a25   :  { %v2479_v49 = vadd.f32 %v2477_v59, %v2468_v5 }
0x1a27   :  { %2492 = vrot.lane.b32.xlu1 %v2479_v49, %s3273_s30 }
0x1a99   :  { %v2493_v10 = vpop.permute.xlu1 %2492 }
0x1a9a   :  { %2940 = vmatmul.mubr.msk.f32.vlgmr.msra.gmra.mrb[22].mxu0 %vm76_vm1, %v2493_v10 }
0x1b6d   :  { %v2562_v34 = vpop.f32.mrb[22].mxu0 }
0x1b6e   :  { %v2563_v19 = vadd.f32 %v2634_v3, %v2562_v34  ;;  %v2941_v23 = vpop.f32.mrb[23].mxu0 }
0x1b70   :  { %2567 = vst.msk [vmem:[#allocation3] sm:$0x3] %vm2566_vm6, %v2563_v19 }
0x1b71   :  { %3256 = shalt.err (!%p3253_p4)
}
0x1b72   :  { %s3257_s19 = scalar_lea.hbm %s3944_s16, 32 }
0x1b73   :  { %p3258_p5 = scmp.ne.s32.totalorder %s3944_s16, %s3257_s19  ;;  %p3261_p6 = scmp.lt.u32.totalorder %s3257_s19, %s3944_s16 }
0x1b75   :  { %p3263_p7 = pnand %p3261_p6, %p3258_p5 }
0x1b77   :  { %3266 = shalt.err (!%p3263_p7)
}
0x1b78   :  { %2577 = dma.vmem_to_hbm [thread:$0]  %s2575_s18, 32, %s3944_s16, [#allocation4]  }
0x1b79   :  { %3267 = dma.done.wait [#allocation4], 32  }
0x1b7a   :  { %3268 = vsyncadd [#allocation4], 4294967264 }
0x1b7b   :  { %2581 = vsyncpa [#allocation4], 1 }

</bundles_post_ra>
